<compile_context>
chip_gen: v6e
topology: v6e:2x2x1
jax: 0.10.0
libtpu: 0.0.40
codegen_flags: <defaults>
</compile_context>

<pallas_src>
import jax
import jax.numpy as jnp
from jax.experimental import pallas as pl
from jax.experimental.pallas import tpu as pltpu


def bilstm_kernel(x_ref,
                  wih_f_ref, whh_f_ref, b_f_ref,
                  wih_b_ref, b_b_ref,
                  wout_f_ref, wout_b_ref, bout_ref,
                  out_ref):
    Bp = out_ref.shape[0]            # padded (sublane-aligned) batch
    TB = x_ref.shape[0]
    T = TB // Bp
    Hp = whh_f_ref.shape[0]          # padded (lane-aligned) per-gate width

    x = x_ref[...]                   # (T*Bp, E) bf16, time-major rows
    whh_f = whh_f_ref[...]           # (Hp, 4*Hp) bf16, resident across steps

    # ---- hoisted fused input projection: one MXU matmul, bias folded once ----
    # No dependence on h, so it is fully off the serial recurrence chain.
    xp = (jnp.dot(x, wih_f_ref[...], preferred_element_type=jnp.float32)
          + b_f_ref[...])            # (T*Bp, 4*Hp) f32
    # TODO(synk): at production T, keep xp in bf16 / compute it per-T-chunk via
    # a grid over T carrying h,c in VMEM scratch (fits v7x's 64 MiB VMEM), and
    # add a 'parallel' batch grid axis so v7x's two TensorCores split the work.

    h = jnp.zeros((Bp, Hp), jnp.float32)
    c = jnp.zeros((Bp, Hp), jnp.float32)

    # ---- forward recurrence, fully unrolled (T static & small) --------------
    # Gate blocks are lane-aligned (k*Hp) and per-step slabs sublane-aligned
    # (Bp % 8 == 0), so every slice below is a zero-cost static vreg view.
    # TODO(synk): hold whh_f in the MXU across steps (pltpu.matmul_push_rhs /
    # matmul_acc_lhs / matmul_pop) to drop the per-step weight re-push from the
    # serial critical path.
    for t in range(T):
        g = xp[t * Bp:(t + 1) * Bp, :] + jnp.dot(
            h.astype(jnp.bfloat16), whh_f, preferred_element_type=jnp.float32)
        s = jax.nn.sigmoid(g)                      # one EUP pass over (Bp, 4*Hp)
        i = s[:, 0 * Hp:1 * Hp]
        f = s[:, 1 * Hp:2 * Hp]
        o = s[:, 3 * Hp:4 * Hp]
        gg = jnp.tanh(g[:, 2 * Hp:3 * Hp])
        c = f * c + i * gg
        h = o * jnp.tanh(c)
    h_f = h

    # ---- reverse direction: single step on x[T-1] with zero initial state ---
    # That is exactly lstm_out[-1][:, H:] in PyTorch; h @ W_hh_b and the
    # forget-gate term vanish because h0 = c0 = 0 (hence no whh_b input).
    gb = (jnp.dot(x[(T - 1) * Bp:T * Bp, :], wih_b_ref[...],
                  preferred_element_type=jnp.float32) + b_b_ref[...])
    sb = jax.nn.sigmoid(gb)
    c_b = sb[:, 0 * Hp:1 * Hp] * jnp.tanh(gb[:, 2 * Hp:3 * Hp])
    h_b = sb[:, 3 * Hp:4 * Hp] * jnp.tanh(c_b)

    # ---- hidden2label (split fwd/bwd halves) + log_softmax over Lp lanes -----
    y = (jnp.dot(h_f.astype(jnp.bfloat16), wout_f_ref[...],
                 preferred_element_type=jnp.float32)
         + jnp.dot(h_b.astype(jnp.bfloat16), wout_b_ref[...],
                   preferred_element_type=jnp.float32)
         + bout_ref[...])            # padded label columns carry a -1e30 bias
    m = jnp.max(y, axis=-1, keepdims=True)
    z = y - m
    lse = jnp.log(jnp.sum(jnp.exp(z), axis=-1, keepdims=True))
    out_ref[...] = z - lse


def _pad_gates_last(w, H, Hp):
    """(..., 4*H) gate-major (i|f|g|o) -> (..., 4*Hp), each gate lane-aligned
    at offset k*Hp, zero-padded (exactness preserved)."""
    if Hp == H:
        return w
    lead = w.shape[:-1]
    w4 = w.reshape(lead + (4, H))
    w4 = jnp.pad(w4, [(0, 0)] * (len(lead) + 1) + [(0, Hp - H)])
    return w4.reshape(lead + (4 * Hp,))


def bilstm_sentiment_forward(tokens, params):
    """tokens: (B, T) int32.  Returns (B, L) f32 log-probs."""
    B, T = tokens.shape
    H = params["whh_f"].shape[0]
    L = params["bout"].shape[1]

    Bp = max(8, -(-B // 8) * 8)          # sublane-aligned batch rows
    Hp = max(128, -(-H // 128) * 128)    # lane-aligned per-gate width
    Lp = max(128, -(-L // 128) * 128)    # lane-dense output store

    # Embedding gather directly in time-major flattened order (t0b0, t0b1, ...);
    # bf16 table halves gather bandwidth and no extra cast is materialized.
    # TODO(synk): at realistic vocab/emb sizes, fuse this gather into the kernel
    # via PrefetchScalarGridSpec + pl.Element row blocks to skip an HBM round trip.
    tok_p = jnp.pad(tokens, ((0, Bp - B), (0, 0)))
    flat_ids = tok_p.T.reshape(T * Bp)
    x2d = params["embedding"][flat_ids]                      # (T*Bp, E) bf16

    # Pad weights to lane/sublane-aligned layouts (zero padding keeps the math
    # exact; padded h/c lanes stay 0 through the recurrence).
    wih_f = _pad_gates_last(params["wih_f"], H, Hp)
    whh_f = _pad_gates_last(jnp.pad(params["whh_f"], ((0, Hp - H), (0, 0))), H, Hp)
    b_f = _pad_gates_last(params["b_f"], H, Hp)
    wih_b = _pad_gates_last(params["wih_b"], H, Hp)
    b_b = _pad_gates_last(params["b_b"], H, Hp)
    wout_f = jnp.pad(params["wout_f"], ((0, Hp - H), (0, Lp - L)))
    wout_b = jnp.pad(params["wout_b"], ((0, Hp - H), (0, Lp - L)))
    bout = jnp.pad(params["bout"], ((0, 0), (0, Lp - L)), constant_values=-1e30)

    vmem = pl.BlockSpec(memory_space=pltpu.MemorySpace.VMEM)
    args = (x2d, wih_f, whh_f, b_f, wih_b, b_b, wout_f, wout_b, bout)

    out = pl.pallas_call(
        bilstm_kernel,
        out_shape=jax.ShapeDtypeStruct((Bp, Lp), jnp.float32),
        in_specs=[vmem] * len(args),
        out_specs=vmem,
        compiler_params=pltpu.CompilerParams(
            vmem_limit_bytes=32 * 1024 * 1024),
    )(*args)
    return out[:B, :L]


def init_params(key, vocab_size, emb_dim, hidden_dim, label_size):
    """Fused-gate layout:  W_ih (E, 4H), W_hh (H, 4H), b (1, 4H), gate order
    i|f|g|o along the 4H dim (== transposed, column-blocked PyTorch
    weight_{ih,hh}_l0 with b = b_ih + b_hh).  hidden2label weight (2H, L) is
    split into forward (H, L) / backward (H, L) halves.  whh_b is intentionally
    absent: lstm_out[-1][:, H:] never multiplies it (zero initial state)."""
    ks = jax.random.split(key, 11)
    s_lstm = 1.0 / float(hidden_dim) ** 0.5
    s_lin = 1.0 / float(2 * hidden_dim) ** 0.5
    H4 = 4 * hidden_dim

    def u(k, shape, scale):
        return jax.random.uniform(k, shape, jnp.float32, -scale, scale)

    return {
        "embedding": jax.random.normal(
            ks[0], (vocab_size, emb_dim), jnp.float32).astype(jnp.bfloat16),
        # forward-direction LSTM (bf16 matmul operands, f32 biases)
        "wih_f": u(ks[1], (emb_dim, H4), s_lstm).astype(jnp.bfloat16),
        "whh_f": u(ks[2], (hidden_dim, H4), s_lstm).astype(jnp.bfloat16),
        "b_f": u(ks[3], (1, H4), s_lstm) + u(ks[4], (1, H4), s_lstm),
        # backward-direction LSTM (only its first step is ever observed)
        "wih_b": u(ks[5], (emb_dim, H4), s_lstm).astype(jnp.bfloat16),
        "b_b": u(ks[6], (1, H4), s_lstm) + u(ks[7], (1, H4), s_lstm),
        # hidden2label split into forward/backward halves
        "wout_f": u(ks[8], (hidden_dim, label_size), s_lin).astype(jnp.bfloat16),
        "wout_b": u(ks[9], (hidden_dim, label_size), s_lin).astype(jnp.bfloat16),
        "bout": u(ks[10], (1, label_size), s_lin),
    }


if __name__ == "__main__":
    # Small, module-consistent shapes: batch=2, seq=8, vocab=50, emb=16, hidden=32, labels=4.
    B, T, V, E, H, L = 2, 8, 50, 16, 32, 4
    key = jax.random.PRNGKey(0)
    k_tok, k_par = jax.random.split(key)

    tokens = jax.random.randint(k_tok, (B, T), 0, V, dtype=jnp.int32)
    params = init_params(k_par, V, E, H, L)

    log_probs = bilstm_sentiment_forward(tokens, params)
    log_probs = jax.block_until_ready(log_probs)
    assert log_probs.shape == (B, L)
    assert bool(jnp.all(jnp.isfinite(log_probs)))
    # log_softmax rows must sum to ~1 in prob space
    assert bool(jnp.all(jnp.abs(jnp.sum(jnp.exp(log_probs), axis=-1) - 1.0) < 1e-3))
    print("KERNEL_OK")
</pallas_src>

<mosaic_0001>
module attributes {stable_mosaic.version = 11 : i64} {
  func.func @bilstm_kernel(%arg0: memref<64x16xbf16, #tpu.memory_space<vmem>>, %arg1: memref<16x512xbf16, #tpu.memory_space<vmem>>, %arg2: memref<128x512xbf16, #tpu.memory_space<vmem>>, %arg3: memref<1x512xf32, #tpu.memory_space<vmem>>, %arg4: memref<16x512xbf16, #tpu.memory_space<vmem>>, %arg5: memref<1x512xf32, #tpu.memory_space<vmem>>, %arg6: memref<128x128xbf16, #tpu.memory_space<vmem>>, %arg7: memref<128x128xbf16, #tpu.memory_space<vmem>>, %arg8: memref<1x128xf32, #tpu.memory_space<vmem>>, %arg9: memref<8x128xf32, #tpu.memory_space<vmem>>) attributes {dimension_semantics = [], scalar_prefetch = 0 : i64, scratch_operands = 0 : i64, tpu.core_type = #tpu.core_type<tc>} {
    %c0 = arith.constant 0 : index
    %c0_0 = arith.constant 0 : index
    %0 = vector.load %arg0[%c0, %c0_0] : memref<64x16xbf16, #tpu.memory_space<vmem>>, vector<64x16xbf16>
    %c0_1 = arith.constant 0 : index
    %c0_2 = arith.constant 0 : index
    %1 = vector.load %arg2[%c0_1, %c0_2] : memref<128x512xbf16, #tpu.memory_space<vmem>>, vector<128x512xbf16>
    %c0_3 = arith.constant 0 : index
    %c0_4 = arith.constant 0 : index
    %2 = vector.load %arg1[%c0_3, %c0_4] : memref<16x512xbf16, #tpu.memory_space<vmem>>, vector<16x512xbf16>
    %cst = arith.constant dense<0.000000e+00> : vector<64x512xf32>
    %3 = tpu.matmul %0, %2, %cst {dimension_numbers = #tpu.dot_dimension_numbers<[1], [0], [0], [1], [0, 0, 1, 1], [], []>} : vector<64x16xbf16>, vector<16x512xbf16>, vector<64x512xf32> -> vector<64x512xf32>
    %c0_5 = arith.constant 0 : index
    %c0_6 = arith.constant 0 : index
    %4 = vector.load %arg3[%c0_5, %c0_6] : memref<1x512xf32, #tpu.memory_space<vmem>>, vector<1x512xf32>
    %5 = vector.broadcast %4 : vector<1x512xf32> to vector<64x512xf32>
    %6 = arith.addf %3, %5 : vector<64x512xf32>
    %cst_7 = arith.constant 0.000000e+00 : f32
    %7 = vector.broadcast %cst_7 : f32 to vector<8x128xf32>
    %cst_8 = arith.constant 0.000000e+00 : f32
    %8 = vector.broadcast %cst_8 : f32 to vector<8x128xf32>
    %9 = vector.extract_strided_slice %6 {offsets = [0, 0], sizes = [8, 512], strides = [1, 1]} : vector<64x512xf32> to vector<8x512xf32>
    %10 = arith.truncf %7 : vector<8x128xf32> to vector<8x128xbf16>
    %cst_9 = arith.constant dense<0.000000e+00> : vector<8x512xf32>
    %11 = tpu.matmul %10, %1, %cst_9 {dimension_numbers = #tpu.dot_dimension_numbers<[1], [0], [0], [1], [0, 0, 1, 1], [], []>} : vector<8x128xbf16>, vector<128x512xbf16>, vector<8x512xf32> -> vector<8x512xf32>
    %12 = arith.addf %9, %11 : vector<8x512xf32>
    %13 = arith.negf %12 : vector<8x512xf32>
    %14 = math.exp %13 : vector<8x512xf32>
    %cst_10 = arith.constant 1.000000e+00 : f32
    %15 = vector.broadcast %cst_10 : f32 to vector<8x512xf32>
    %16 = arith.addf %15, %14 : vector<8x512xf32>
    %17 = arith.divf %15, %16 : vector<8x512xf32>
    %18 = vector.extract_strided_slice %17 {offsets = [0, 0], sizes = [8, 128], strides = [1, 1]} : vector<8x512xf32> to vector<8x128xf32>
    %19 = vector.extract_strided_slice %17 {offsets = [0, 128], sizes = [8, 128], strides = [1, 1]} : vector<8x512xf32> to vector<8x128xf32>
    %20 = vector.extract_strided_slice %17 {offsets = [0, 384], sizes = [8, 128], strides = [1, 1]} : vector<8x512xf32> to vector<8x128xf32>
    %21 = vector.extract_strided_slice %12 {offsets = [0, 256], sizes = [8, 128], strides = [1, 1]} : vector<8x512xf32> to vector<8x128xf32>
    %22 = math.tanh %21 : vector<8x128xf32>
    %23 = arith.mulf %19, %8 : vector<8x128xf32>
    %24 = arith.mulf %18, %22 : vector<8x128xf32>
    %25 = arith.addf %23, %24 : vector<8x128xf32>
    %26 = math.tanh %25 : vector<8x128xf32>
    %27 = arith.mulf %20, %26 : vector<8x128xf32>
    %28 = vector.extract_strided_slice %6 {offsets = [8, 0], sizes = [8, 512], strides = [1, 1]} : vector<64x512xf32> to vector<8x512xf32>
    %29 = arith.truncf %27 : vector<8x128xf32> to vector<8x128xbf16>
    %cst_11 = arith.constant dense<0.000000e+00> : vector<8x512xf32>
    %30 = tpu.matmul %29, %1, %cst_11 {dimension_numbers = #tpu.dot_dimension_numbers<[1], [0], [0], [1], [0, 0, 1, 1], [], []>} : vector<8x128xbf16>, vector<128x512xbf16>, vector<8x512xf32> -> vector<8x512xf32>
    %31 = arith.addf %28, %30 : vector<8x512xf32>
    %32 = arith.negf %31 : vector<8x512xf32>
    %33 = math.exp %32 : vector<8x512xf32>
    %cst_12 = arith.constant 1.000000e+00 : f32
    %34 = vector.broadcast %cst_12 : f32 to vector<8x512xf32>
    %35 = arith.addf %34, %33 : vector<8x512xf32>
    %36 = arith.divf %34, %35 : vector<8x512xf32>
    %37 = vector.extract_strided_slice %36 {offsets = [0, 0], sizes = [8, 128], strides = [1, 1]} : vector<8x512xf32> to vector<8x128xf32>
    %38 = vector.extract_strided_slice %36 {offsets = [0, 128], sizes = [8, 128], strides = [1, 1]} : vector<8x512xf32> to vector<8x128xf32>
    %39 = vector.extract_strided_slice %36 {offsets = [0, 384], sizes = [8, 128], strides = [1, 1]} : vector<8x512xf32> to vector<8x128xf32>
    %40 = vector.extract_strided_slice %31 {offsets = [0, 256], sizes = [8, 128], strides = [1, 1]} : vector<8x512xf32> to vector<8x128xf32>
    %41 = math.tanh %40 : vector<8x128xf32>
    %42 = arith.mulf %38, %25 : vector<8x128xf32>
    %43 = arith.mulf %37, %41 : vector<8x128xf32>
    %44 = arith.addf %42, %43 : vector<8x128xf32>
    %45 = math.tanh %44 : vector<8x128xf32>
    %46 = arith.mulf %39, %45 : vector<8x128xf32>
    %47 = vector.extract_strided_slice %6 {offsets = [16, 0], sizes = [8, 512], strides = [1, 1]} : vector<64x512xf32> to vector<8x512xf32>
    %48 = arith.truncf %46 : vector<8x128xf32> to vector<8x128xbf16>
    %cst_13 = arith.constant dense<0.000000e+00> : vector<8x512xf32>
    %49 = tpu.matmul %48, %1, %cst_13 {dimension_numbers = #tpu.dot_dimension_numbers<[1], [0], [0], [1], [0, 0, 1, 1], [], []>} : vector<8x128xbf16>, vector<128x512xbf16>, vector<8x512xf32> -> vector<8x512xf32>
    %50 = arith.addf %47, %49 : vector<8x512xf32>
    %51 = arith.negf %50 : vector<8x512xf32>
    %52 = math.exp %51 : vector<8x512xf32>
    %cst_14 = arith.constant 1.000000e+00 : f32
    %53 = vector.broadcast %cst_14 : f32 to vector<8x512xf32>
    %54 = arith.addf %53, %52 : vector<8x512xf32>
    %55 = arith.divf %53, %54 : vector<8x512xf32>
    %56 = vector.extract_strided_slice %55 {offsets = [0, 0], sizes = [8, 128], strides = [1, 1]} : vector<8x512xf32> to vector<8x128xf32>
    %57 = vector.extract_strided_slice %55 {offsets = [0, 128], sizes = [8, 128], strides = [1, 1]} : vector<8x512xf32> to vector<8x128xf32>
    %58 = vector.extract_strided_slice %55 {offsets = [0, 384], sizes = [8, 128], strides = [1, 1]} : vector<8x512xf32> to vector<8x128xf32>
    %59 = vector.extract_strided_slice %50 {offsets = [0, 256], sizes = [8, 128], strides = [1, 1]} : vector<8x512xf32> to vector<8x128xf32>
    %60 = math.tanh %59 : vector<8x128xf32>
    %61 = arith.mulf %57, %44 : vector<8x128xf32>
    %62 = arith.mulf %56, %60 : vector<8x128xf32>
    %63 = arith.addf %61, %62 : vector<8x128xf32>
    %64 = math.tanh %63 : vector<8x128xf32>
    %65 = arith.mulf %58, %64 : vector<8x128xf32>
    %66 = vector.extract_strided_slice %6 {offsets = [24, 0], sizes = [8, 512], strides = [1, 1]} : vector<64x512xf32> to vector<8x512xf32>
    %67 = arith.truncf %65 : vector<8x128xf32> to vector<8x128xbf16>
    %cst_15 = arith.constant dense<0.000000e+00> : vector<8x512xf32>
    %68 = tpu.matmul %67, %1, %cst_15 {dimension_numbers = #tpu.dot_dimension_numbers<[1], [0], [0], [1], [0, 0, 1, 1], [], []>} : vector<8x128xbf16>, vector<128x512xbf16>, vector<8x512xf32> -> vector<8x512xf32>
    %69 = arith.addf %66, %68 : vector<8x512xf32>
    %70 = arith.negf %69 : vector<8x512xf32>
    %71 = math.exp %70 : vector<8x512xf32>
    %cst_16 = arith.constant 1.000000e+00 : f32
    %72 = vector.broadcast %cst_16 : f32 to vector<8x512xf32>
    %73 = arith.addf %72, %71 : vector<8x512xf32>
    %74 = arith.divf %72, %73 : vector<8x512xf32>
    %75 = vector.extract_strided_slice %74 {offsets = [0, 0], sizes = [8, 128], strides = [1, 1]} : vector<8x512xf32> to vector<8x128xf32>
    %76 = vector.extract_strided_slice %74 {offsets = [0, 128], sizes = [8, 128], strides = [1, 1]} : vector<8x512xf32> to vector<8x128xf32>
    %77 = vector.extract_strided_slice %74 {offsets = [0, 384], sizes = [8, 128], strides = [1, 1]} : vector<8x512xf32> to vector<8x128xf32>
    %78 = vector.extract_strided_slice %69 {offsets = [0, 256], sizes = [8, 128], strides = [1, 1]} : vector<8x512xf32> to vector<8x128xf32>
    %79 = math.tanh %78 : vector<8x128xf32>
    %80 = arith.mulf %76, %63 : vector<8x128xf32>
    %81 = arith.mulf %75, %79 : vector<8x128xf32>
    %82 = arith.addf %80, %81 : vector<8x128xf32>
    %83 = math.tanh %82 : vector<8x128xf32>
    %84 = arith.mulf %77, %83 : vector<8x128xf32>
    %85 = vector.extract_strided_slice %6 {offsets = [32, 0], sizes = [8, 512], strides = [1, 1]} : vector<64x512xf32> to vector<8x512xf32>
    %86 = arith.truncf %84 : vector<8x128xf32> to vector<8x128xbf16>
    %cst_17 = arith.constant dense<0.000000e+00> : vector<8x512xf32>
    %87 = tpu.matmul %86, %1, %cst_17 {dimension_numbers = #tpu.dot_dimension_numbers<[1], [0], [0], [1], [0, 0, 1, 1], [], []>} : vector<8x128xbf16>, vector<128x512xbf16>, vector<8x512xf32> -> vector<8x512xf32>
    %88 = arith.addf %85, %87 : vector<8x512xf32>
    %89 = arith.negf %88 : vector<8x512xf32>
    %90 = math.exp %89 : vector<8x512xf32>
    %cst_18 = arith.constant 1.000000e+00 : f32
    %91 = vector.broadcast %cst_18 : f32 to vector<8x512xf32>
    %92 = arith.addf %91, %90 : vector<8x512xf32>
    %93 = arith.divf %91, %92 : vector<8x512xf32>
    %94 = vector.extract_strided_slice %93 {offsets = [0, 0], sizes = [8, 128], strides = [1, 1]} : vector<8x512xf32> to vector<8x128xf32>
    %95 = vector.extract_strided_slice %93 {offsets = [0, 128], sizes = [8, 128], strides = [1, 1]} : vector<8x512xf32> to vector<8x128xf32>
    %96 = vector.extract_strided_slice %93 {offsets = [0, 384], sizes = [8, 128], strides = [1, 1]} : vector<8x512xf32> to vector<8x128xf32>
    %97 = vector.extract_strided_slice %88 {offsets = [0, 256], sizes = [8, 128], strides = [1, 1]} : vector<8x512xf32> to vector<8x128xf32>
    %98 = math.tanh %97 : vector<8x128xf32>
    %99 = arith.mulf %95, %82 : vector<8x128xf32>
    %100 = arith.mulf %94, %98 : vector<8x128xf32>
    %101 = arith.addf %99, %100 : vector<8x128xf32>
    %102 = math.tanh %101 : vector<8x128xf32>
    %103 = arith.mulf %96, %102 : vector<8x128xf32>
    %104 = vector.extract_strided_slice %6 {offsets = [40, 0], sizes = [8, 512], strides = [1, 1]} : vector<64x512xf32> to vector<8x512xf32>
    %105 = arith.truncf %103 : vector<8x128xf32> to vector<8x128xbf16>
    %cst_19 = arith.constant dense<0.000000e+00> : vector<8x512xf32>
    %106 = tpu.matmul %105, %1, %cst_19 {dimension_numbers = #tpu.dot_dimension_numbers<[1], [0], [0], [1], [0, 0, 1, 1], [], []>} : vector<8x128xbf16>, vector<128x512xbf16>, vector<8x512xf32> -> vector<8x512xf32>
    %107 = arith.addf %104, %106 : vector<8x512xf32>
    %108 = arith.negf %107 : vector<8x512xf32>
    %109 = math.exp %108 : vector<8x512xf32>
    %cst_20 = arith.constant 1.000000e+00 : f32
    %110 = vector.broadcast %cst_20 : f32 to vector<8x512xf32>
    %111 = arith.addf %110, %109 : vector<8x512xf32>
    %112 = arith.divf %110, %111 : vector<8x512xf32>
    %113 = vector.extract_strided_slice %112 {offsets = [0, 0], sizes = [8, 128], strides = [1, 1]} : vector<8x512xf32> to vector<8x128xf32>
    %114 = vector.extract_strided_slice %112 {offsets = [0, 128], sizes = [8, 128], strides = [1, 1]} : vector<8x512xf32> to vector<8x128xf32>
    %115 = vector.extract_strided_slice %112 {offsets = [0, 384], sizes = [8, 128], strides = [1, 1]} : vector<8x512xf32> to vector<8x128xf32>
    %116 = vector.extract_strided_slice %107 {offsets = [0, 256], sizes = [8, 128], strides = [1, 1]} : vector<8x512xf32> to vector<8x128xf32>
    %117 = math.tanh %116 : vector<8x128xf32>
    %118 = arith.mulf %114, %101 : vector<8x128xf32>
    %119 = arith.mulf %113, %117 : vector<8x128xf32>
    %120 = arith.addf %118, %119 : vector<8x128xf32>
    %121 = math.tanh %120 : vector<8x128xf32>
    %122 = arith.mulf %115, %121 : vector<8x128xf32>
    %123 = vector.extract_strided_slice %6 {offsets = [48, 0], sizes = [8, 512], strides = [1, 1]} : vector<64x512xf32> to vector<8x512xf32>
    %124 = arith.truncf %122 : vector<8x128xf32> to vector<8x128xbf16>
    %cst_21 = arith.constant dense<0.000000e+00> : vector<8x512xf32>
    %125 = tpu.matmul %124, %1, %cst_21 {dimension_numbers = #tpu.dot_dimension_numbers<[1], [0], [0], [1], [0, 0, 1, 1], [], []>} : vector<8x128xbf16>, vector<128x512xbf16>, vector<8x512xf32> -> vector<8x512xf32>
    %126 = arith.addf %123, %125 : vector<8x512xf32>
    %127 = arith.negf %126 : vector<8x512xf32>
    %128 = math.exp %127 : vector<8x512xf32>
    %cst_22 = arith.constant 1.000000e+00 : f32
    %129 = vector.broadcast %cst_22 : f32 to vector<8x512xf32>
    %130 = arith.addf %129, %128 : vector<8x512xf32>
    %131 = arith.divf %129, %130 : vector<8x512xf32>
    %132 = vector.extract_strided_slice %131 {offsets = [0, 0], sizes = [8, 128], strides = [1, 1]} : vector<8x512xf32> to vector<8x128xf32>
    %133 = vector.extract_strided_slice %131 {offsets = [0, 128], sizes = [8, 128], strides = [1, 1]} : vector<8x512xf32> to vector<8x128xf32>
    %134 = vector.extract_strided_slice %131 {offsets = [0, 384], sizes = [8, 128], strides = [1, 1]} : vector<8x512xf32> to vector<8x128xf32>
    %135 = vector.extract_strided_slice %126 {offsets = [0, 256], sizes = [8, 128], strides = [1, 1]} : vector<8x512xf32> to vector<8x128xf32>
    %136 = math.tanh %135 : vector<8x128xf32>
    %137 = arith.mulf %133, %120 : vector<8x128xf32>
    %138 = arith.mulf %132, %136 : vector<8x128xf32>
    %139 = arith.addf %137, %138 : vector<8x128xf32>
    %140 = math.tanh %139 : vector<8x128xf32>
    %141 = arith.mulf %134, %140 : vector<8x128xf32>
    %142 = vector.extract_strided_slice %6 {offsets = [56, 0], sizes = [8, 512], strides = [1, 1]} : vector<64x512xf32> to vector<8x512xf32>
    %143 = arith.truncf %141 : vector<8x128xf32> to vector<8x128xbf16>
    %cst_23 = arith.constant dense<0.000000e+00> : vector<8x512xf32>
    %144 = tpu.matmul %143, %1, %cst_23 {dimension_numbers = #tpu.dot_dimension_numbers<[1], [0], [0], [1], [0, 0, 1, 1], [], []>} : vector<8x128xbf16>, vector<128x512xbf16>, vector<8x512xf32> -> vector<8x512xf32>
    %145 = arith.addf %142, %144 : vector<8x512xf32>
    %146 = arith.negf %145 : vector<8x512xf32>
    %147 = math.exp %146 : vector<8x512xf32>
    %cst_24 = arith.constant 1.000000e+00 : f32
    %148 = vector.broadcast %cst_24 : f32 to vector<8x512xf32>
    %149 = arith.addf %148, %147 : vector<8x512xf32>
    %150 = arith.divf %148, %149 : vector<8x512xf32>
    %151 = vector.extract_strided_slice %150 {offsets = [0, 0], sizes = [8, 128], strides = [1, 1]} : vector<8x512xf32> to vector<8x128xf32>
    %152 = vector.extract_strided_slice %150 {offsets = [0, 128], sizes = [8, 128], strides = [1, 1]} : vector<8x512xf32> to vector<8x128xf32>
    %153 = vector.extract_strided_slice %150 {offsets = [0, 384], sizes = [8, 128], strides = [1, 1]} : vector<8x512xf32> to vector<8x128xf32>
    %154 = vector.extract_strided_slice %145 {offsets = [0, 256], sizes = [8, 128], strides = [1, 1]} : vector<8x512xf32> to vector<8x128xf32>
    %155 = math.tanh %154 : vector<8x128xf32>
    %156 = arith.mulf %152, %139 : vector<8x128xf32>
    %157 = arith.mulf %151, %155 : vector<8x128xf32>
    %158 = arith.addf %156, %157 : vector<8x128xf32>
    %159 = math.tanh %158 : vector<8x128xf32>
    %160 = arith.mulf %153, %159 : vector<8x128xf32>
    %161 = vector.extract_strided_slice %0 {offsets = [56, 0], sizes = [8, 16], strides = [1, 1]} : vector<64x16xbf16> to vector<8x16xbf16>
    %c0_25 = arith.constant 0 : index
    %c0_26 = arith.constant 0 : index
    %162 = vector.load %arg4[%c0_25, %c0_26] : memref<16x512xbf16, #tpu.memory_space<vmem>>, vector<16x512xbf16>
    %cst_27 = arith.constant dense<0.000000e+00> : vector<8x512xf32>
    %163 = tpu.matmul %161, %162, %cst_27 {dimension_numbers = #tpu.dot_dimension_numbers<[1], [0], [0], [1], [0, 0, 1, 1], [], []>} : vector<8x16xbf16>, vector<16x512xbf16>, vector<8x512xf32> -> vector<8x512xf32>
    %c0_28 = arith.constant 0 : index
    %c0_29 = arith.constant 0 : index
    %164 = vector.load %arg5[%c0_28, %c0_29] : memref<1x512xf32, #tpu.memory_space<vmem>>, vector<1x512xf32>
    %165 = vector.broadcast %164 : vector<1x512xf32> to vector<8x512xf32>
    %166 = arith.addf %163, %165 : vector<8x512xf32>
    %167 = arith.negf %166 : vector<8x512xf32>
    %168 = math.exp %167 : vector<8x512xf32>
    %cst_30 = arith.constant 1.000000e+00 : f32
    %169 = vector.broadcast %cst_30 : f32 to vector<8x512xf32>
    %170 = arith.addf %169, %168 : vector<8x512xf32>
    %171 = arith.divf %169, %170 : vector<8x512xf32>
    %172 = vector.extract_strided_slice %171 {offsets = [0, 0], sizes = [8, 128], strides = [1, 1]} : vector<8x512xf32> to vector<8x128xf32>
    %173 = vector.extract_strided_slice %166 {offsets = [0, 256], sizes = [8, 128], strides = [1, 1]} : vector<8x512xf32> to vector<8x128xf32>
    %174 = math.tanh %173 : vector<8x128xf32>
    %175 = arith.mulf %172, %174 : vector<8x128xf32>
    %176 = vector.extract_strided_slice %171 {offsets = [0, 384], sizes = [8, 128], strides = [1, 1]} : vector<8x512xf32> to vector<8x128xf32>
    %177 = math.tanh %175 : vector<8x128xf32>
    %178 = arith.mulf %176, %177 : vector<8x128xf32>
    %179 = arith.truncf %160 : vector<8x128xf32> to vector<8x128xbf16>
    %c0_31 = arith.constant 0 : index
    %c0_32 = arith.constant 0 : index
    %180 = vector.load %arg6[%c0_31, %c0_32] : memref<128x128xbf16, #tpu.memory_space<vmem>>, vector<128x128xbf16>
    %cst_33 = arith.constant dense<0.000000e+00> : vector<8x128xf32>
    %181 = tpu.matmul %179, %180, %cst_33 {dimension_numbers = #tpu.dot_dimension_numbers<[1], [0], [0], [1], [0, 0, 1, 1], [], []>} : vector<8x128xbf16>, vector<128x128xbf16>, vector<8x128xf32> -> vector<8x128xf32>
    %182 = arith.truncf %178 : vector<8x128xf32> to vector<8x128xbf16>
    %c0_34 = arith.constant 0 : index
    %c0_35 = arith.constant 0 : index
    %183 = vector.load %arg7[%c0_34, %c0_35] : memref<128x128xbf16, #tpu.memory_space<vmem>>, vector<128x128xbf16>
    %cst_36 = arith.constant dense<0.000000e+00> : vector<8x128xf32>
    %184 = tpu.matmul %182, %183, %cst_36 {dimension_numbers = #tpu.dot_dimension_numbers<[1], [0], [0], [1], [0, 0, 1, 1], [], []>} : vector<8x128xbf16>, vector<128x128xbf16>, vector<8x128xf32> -> vector<8x128xf32>
    %185 = arith.addf %181, %184 : vector<8x128xf32>
    %c0_37 = arith.constant 0 : index
    %c0_38 = arith.constant 0 : index
    %186 = vector.load %arg8[%c0_37, %c0_38] : memref<1x128xf32, #tpu.memory_space<vmem>>, vector<1x128xf32>
    %187 = vector.broadcast %186 : vector<1x128xf32> to vector<8x128xf32>
    %188 = arith.addf %185, %187 : vector<8x128xf32>
    %cst_39 = arith.constant dense<0xFF800000> : vector<8xf32>
    %189 = vector.multi_reduction <maximumf>, %188, %cst_39 [1] : vector<8x128xf32> to vector<8xf32>
    %190 = vector.shape_cast %189 : vector<8xf32> to vector<8x1xf32>
    %191 = vector.broadcast %190 : vector<8x1xf32> to vector<8x128xf32>
    %192 = arith.subf %188, %191 : vector<8x128xf32>
    %193 = math.exp %192 : vector<8x128xf32>
    %cst_40 = arith.constant dense<0.000000e+00> : vector<8xf32>
    %194 = vector.multi_reduction <add>, %193, %cst_40 [1] : vector<8x128xf32> to vector<8xf32>
    %195 = vector.shape_cast %194 : vector<8xf32> to vector<8x1xf32>
    %196 = math.log %195 : vector<8x1xf32>
    %197 = vector.broadcast %196 : vector<8x1xf32> to vector<8x128xf32>
    %198 = arith.subf %192, %197 : vector<8x128xf32>
    %c0_41 = arith.constant 0 : index
    %c0_42 = arith.constant 0 : index
    %199 = vector.load %arg9[%c0_41, %c0_42] : memref<8x128xf32, #tpu.memory_space<vmem>>, vector<8x128xf32>
    tpu.vector_store %arg9[%c0_41, %c0_42], %198 {strides = array<i32>} : memref<8x128xf32, #tpu.memory_space<vmem>>, vector<8x128xf32>,
    return
  }
}

</mosaic_0001>

<bundles_post_ra>
// kernel: tpu_custom_call.1
= control target key start
LH: loop header
LB: loop body
LE: loop exit
PB: predicated region body
PF: predicated region fallthrough
CT: control target
= control target key end

     0   :  { %14 = vsyncpa [#allocation3], 0  ;;  %s3020_s0 = inlined_call_operand.vmem [shape: bf16[64,16], index: 0, kind: input, shape index: {}]   ;;  %s3021_s1 = inlined_call_operand.vmem [shape: bf16[16,512], index: 1, kind: input, shape index: {}]   ;;  %s3022_s2 = inlined_call_operand.hbm [shape: bf16[128,512], index: 2, kind: input, shape index: {}]   ;;  %s3023_s3 = inlined_call_operand.vmem [shape: f32[1,512], index: 3, kind: input, shape index: {}]   ;;  %s3024_s4 = inlined_call_operand.hbm [shape: bf16[16,512], index: 4, kind: input, shape index: {}]   ;;  %s3025_s5 = inlined_call_operand.vmem [shape: f32[1,512], index: 5, kind: input, shape index: {}]   ;;  %s3026_s6 = inlined_call_operand.hbm [shape: bf16[128,128], index: 6, kind: input, shape index: {}]   ;;  %s3027_s7 = inlined_call_operand.hbm [shape: bf16[128,128], index: 7, kind: input, shape index: {}]   ;;  %s3028_s8 = inlined_call_operand.vmem [shape: f32[1,128], index: 8, kind: input, shape index: {}]   ;;  %s3029_s9 = inlined_call_operand.hbm [shape: f32[8,128], index: 9, kind: output, shape index: {}]  }
   0x1   :  { %15 = vsyncpa [#allocation6], 0 }
   0x2   :  { %16 = vsyncpa [#allocation9], 0 }
   0x3   :  { %17 = vsyncpa [#allocation4], 0  ;;  %s2320_s30 = smov [#allocation5]   ;;  %s2321_s11 = smov [#allocation2]  }
   0x4   :  { %s41_s10 = sshll.u32 %s2320_s30, 4  ;;  %s27_s12 = sshll.u32 %s2321_s11, 4  ;;  %s42_s10 = int_to_ptr.vmem [resolvable:$true] %s41_s10  ;;  %s28_s12 = int_to_ptr.vmem [resolvable:$true] %s27_s12 }
   0x5   :  { %s2220_s13 = scalar_lea.vmem %s42_s10, 512  ;;  %p2225_p1 = scmp.lt.s32.totalorder %s42_s10, %s42_s10 }
   0x6   :  { %p2221_p0 = scmp.ne.s32.totalorder %s42_s10, %s2220_s13  ;;  %p2226_p2 = scmp.lt.s32.totalorder %s2220_s13, %s2220_s13 }
   0x8   :  { %p2227_p3 = por %p2226_p2, %p2225_p1 }
   0xa   :  { %p2228_p4 = pnand %p2227_p3, %p2221_p0 }
   0xc   :  { %2231 = shalt.err (!%p2228_p4)
}
   0xd   :  { %s2322_s14 = smov 256   ;;  %s2323_s15 = smov 16  }
   0xe   :  { %47 = dma.hbm_to_vmem [thread:$0]  %s3024_s4, 512, %s42_s10, [#allocation6], %s2322_s14, %s2322_s14, %s2323_s15  }
   0xf   :  { %s2240_s18 = scalar_lea.vmem %s28_s12, 4096  ;;  %p2245_p6 = scmp.lt.s32.totalorder %s28_s12, %s28_s12 }
  0x10   :  { %p2241_p5 = scmp.ne.s32.totalorder %s28_s12, %s2240_s18  ;;  %p2246_p7 = scmp.lt.s32.totalorder %s2240_s18, %s2240_s18 }
  0x12   :  { %p2247_p8 = por %p2246_p7, %p2245_p6 }
  0x14   :  { %p2248_p9 = pnand %p2247_p8, %p2241_p5 }
  0x16   :  { %2251 = shalt.err (!%p2248_p9)
}
  0x17   :  { %33 = dma.hbm_to_vmem [thread:$0]  %s3022_s2, 4096, %s28_s12, [#allocation3], %s2322_s14, %s2322_s14, %s2323_s15  }
  0x18   :  { %s2324_s21 = smov [#allocation7]  }
  0x19   :  { %s55_s22 = sshll.u32 %s2324_s21, 4  ;;  %s56_s22 = int_to_ptr.vmem [resolvable:$true] %s55_s22 }
  0x1a   :  { %s2260_s23 = scalar_lea.vmem %s56_s22, 1024  ;;  %p2265_p11 = scmp.lt.s32.totalorder %s56_s22, %s56_s22 }
  0x1b   :  { %p2261_p10 = scmp.ne.s32.totalorder %s56_s22, %s2260_s23  ;;  %p2266_p12 = scmp.lt.s32.totalorder %s2260_s23, %s2260_s23 }
  0x1d   :  { %p2267_p13 = por %p2266_p12, %p2265_p11 }
  0x1f   :  { %p2268_p0 = pnand %p2267_p13, %p2261_p10 }
  0x21   :  { %2271 = shalt.err (!%p2268_p0)
}
  0x22   :  { %s2325_s4 = smov 64   ;;  %s2326_s24 = smov 4  }
  0x23   :  { %61 = dma.hbm_to_vmem [thread:$0]  %s3026_s6, 1024, %s56_s22, [#allocation6], %s2325_s4, %s2325_s4, %s2326_s24  }
  0x24   :  { %s2327_s27 = smov [#allocation8]  }
  0x25   :  { %s67_s28 = sshll.u32 %s2327_s27, 4  ;;  %s68_s28 = int_to_ptr.vmem [resolvable:$true] %s67_s28 }
  0x26   :  { %s2280_s2 = scalar_lea.vmem %s68_s28, 1024  ;;  %p2285_p2 = scmp.lt.s32.totalorder %s68_s28, %s68_s28 }
  0x27   :  { %p2281_p1 = scmp.ne.s32.totalorder %s68_s28, %s2280_s2  ;;  %p2286_p3 = scmp.lt.s32.totalorder %s2280_s2, %s2280_s2 }
  0x29   :  { %p2287_p4 = por %p2286_p3, %p2285_p2 }
  0x2b   :  { %p2288_p5 = pnand %p2287_p4, %p2281_p1 }
  0x2d   :  { %2291 = shalt.err (!%p2288_p5)
}
  0x2e   :  { %73 = dma.hbm_to_vmem [thread:$0]  %s3027_s7, 1024, %s68_s28, [#allocation9], %s2325_s4, %s2325_s4, %s2326_s24  }
  0x2f   :  { %2312 = dma.done.wait [#allocation3], 4096  }
  0x30   :  { %2313 = vsyncadd [#allocation3], 4294963200 }
  0x31   :  { %2314 = dma.done.wait [#allocation6], 1536  }
  0x32   :  { %2315 = vsyncadd [#allocation6], 4294965760 }
  0x33   :  { %2316 = dma.done.wait [#allocation9], 1024  }
  0x34   :  { %2317 = vsyncadd [#allocation9], 4294966272  ;;  %v3033_v0 = vmov 0   ;;  %v1955_v1 = vld [vmem:[%s3021_s1 + $0x4] ss:$16 sps:$4 sm:$0xff]   ;;  %vm195_vm0 = vcmask 130048   ;;  %v135_v43 = vlaneseq }
  0x35   :  { %240 = vmatprep.mubr.bf16.mxu0 %v3033_v0  ;;  %313 = vmatprep.mubr.bf16.mxu1 %v3033_v0  ;;  %v1957_v2 = vld [vmem:[%s3021_s1 + $0xc] ss:$16 sps:$4 sm:$0xff]   ;;  %v1959_v3 = vld [vmem:[%s3021_s1] ss:$16 sps:$4 sm:$0xff]   ;;  %v1960_v4 = vld [vmem:[%s3021_s1 + $0x8] ss:$16 sps:$4 sm:$0xff]  }
  0x36   :  { %222 = vmatprep.subr.bf16.mxu0 %v1955_v1  ;;  %295 = vmatprep.subr.bf16.mxu1 %v1957_v2  ;;  %v1961_v5 = vld [vmem:[%s3020_s0] sm:$0xff]   ;;  %v2413_v7 = vld [vmem:[#allocation2 + $0xec] ss:$16 sps:$4 sm:$0xff]   ;;  %v2418_v9 = vld [vmem:[#allocation2 + $0xe8] ss:$16 sps:$4 sm:$0xff]   ;;  %v2573_v44 = vshrl.u32 %v135_v43, 7 }
  0x37   :  { %223 = vmatpush1.bf16.msra.mxu0 %v1959_v3  ;;  %296 = vmatpush1.bf16.msra.mxu1 %v1960_v4  ;;  %v2411_v6 = vld [vmem:[#allocation2 + $0xe4] ss:$16 sps:$4 sm:$0xff]   ;;  %v2415_v8 = vld [vmem:[#allocation2 + $0xe0] ss:$16 sps:$4 sm:$0xff]   ;;  %v2426_v11 = vld [vmem:[#allocation2 + $0xcc] ss:$16 sps:$4 sm:$0xff]  }
  0x38   :  { %514 = vmatprep.subr.bf16.mxu0 %v2411_v6  ;;  %v2422_v10 = vld [vmem:[#allocation2 + $0xc4] ss:$16 sps:$4 sm:$0xff]   ;;  %555 = vmatprep.subr.bf16.mxu1 %v2413_v7  ;;  %v2428_v12 = vld [vmem:[#allocation2 + $0xc0] ss:$16 sps:$4 sm:$0xff]   ;;  %v2430_v13 = vld [vmem:[#allocation2 + $0xc8] ss:$16 sps:$4 sm:$0xff]  }
  0x39   :  { %v1974_v14 = vld [vmem:[%s3020_s0 + $0x8] sm:$0xff]   ;;  %v2439_v15 = vld [vmem:[#allocation2 + $0xa4] ss:$16 sps:$4 sm:$0xff]   ;;  %v2445_v17 = vld [vmem:[#allocation2 + $0xa0] ss:$16 sps:$4 sm:$0xff]   ;;  %3037 = vst [vmem:[#allocation15_spill] sm:$0xff] %v2573_v44 }
  0x3a   :  { %1796 = vmatmul.mubr.msk.bf16.vlgmr.msra.gmra.mxu0 %vm195_vm0, %v1961_v5  ;;  %1800 = vmatmul.mubr.msk.bf16.vlgmr.msra.gmra.mxu1 %vm195_vm0, %v1961_v5  ;;  %v2442_v16 = vld [vmem:[#allocation2 + $0xac] ss:$16 sps:$4 sm:$0xff]   ;;  %v2447_v18 = vld [vmem:[#allocation2 + $0xa8] ss:$16 sps:$4 sm:$0xff]   ;;  %v2451_v19 = vld [vmem:[#allocation2 + $0x84] ss:$16 sps:$4 sm:$0xff]  }
  0x3b   :  { %515 = vmatpush1.bf16.msra.mxu0 %v2415_v8  ;;  %556 = vmatpush1.bf16.msra.mxu1 %v2418_v9  ;;  %v2454_v20 = vld [vmem:[#allocation2 + $0x8c] ss:$16 sps:$4 sm:$0xff]   ;;  %v2458_v21 = vld [vmem:[#allocation2 + $0x80] ss:$16 sps:$4 sm:$0xff]   ;;  %v2461_v22 = vld [vmem:[#allocation2 + $0x88] ss:$16 sps:$4 sm:$0xff]  }
  0x3c   :  { %516 = vmatprep.subr.bf16.mxu0 %v2422_v10  ;;  %557 = vmatprep.subr.bf16.mxu1 %v2426_v11  ;;  %v2466_v23 = vld [vmem:[#allocation2 + $0x64] ss:$16 sps:$4 sm:$0xff]   ;;  %v2470_v24 = vld [vmem:[#allocation2 + $0x6c] ss:$16 sps:$4 sm:$0xff]   ;;  %v2476_v26 = vld [vmem:[#allocation2 + $0x60] ss:$16 sps:$4 sm:$0xff]  }
  0x3d   :  { %250 = vmatprep.mubr.bf16.mxu0 %v3033_v0  ;;  %323 = vmatprep.mubr.bf16.mxu1 %v3033_v0  ;;  %v1987_v25 = vld [vmem:[%s3020_s0 + $0x10] sm:$0xff]   ;;  %v2480_v27 = vld [vmem:[#allocation2 + $0x68] ss:$16 sps:$4 sm:$0xff]   ;;  %v2485_v29 = vld [vmem:[#allocation2 + $0x4c] ss:$16 sps:$4 sm:$0xff]   ;;  %v3030_v45 = vsub.s32 2, %v2573_v44 }
  0x3e   :  { %v2482_v28 = vld [vmem:[#allocation2 + $0x44] ss:$16 sps:$4 sm:$0xff]   ;;  %v2489_v30 = vld [vmem:[#allocation2 + $0x40] ss:$16 sps:$4 sm:$0xff]   ;;  %v2492_v31 = vld [vmem:[#allocation2 + $0x48] ss:$16 sps:$4 sm:$0xff]  }
  0x3f   :  { %517 = vmatpush1.bf16.msra.mxu0 %v2428_v12  ;;  %558 = vmatpush1.bf16.msra.mxu1 %v2430_v13  ;;  %v95_v32 = vld [vmem:[%s3020_s0 + $0x18] sm:$0xf]  ;;  %v96_v33 = vld [vmem:[%s3020_s0 + $0x1c] sm:$0xf]  ;;  %v2503_v34 = vld [vmem:[#allocation2 + $0x24] ss:$16 sps:$4 sm:$0xff]  }
  0x40   :  { %518 = vmatprep.subr.bf16.mxu0 %v2439_v15  ;;  %559 = vmatprep.subr.bf16.mxu1 %v2442_v16  ;;  %v2507_v35 = vld [vmem:[#allocation2 + $0x2c] ss:$16 sps:$4 sm:$0xff]   ;;  %v1791_v36 = vcombine.low %v95_v32, %v96_v33  ;;  %v2509_v37 = vld [vmem:[#allocation2 + $0x20] ss:$16 sps:$4 sm:$0xff]   ;;  %v2511_v38 = vld [vmem:[#allocation2 + $0x28] ss:$16 sps:$4 sm:$0xff]  }
  0x41   :  { %v2513_v39 = vld [vmem:[#allocation2 + $0x4] ss:$16 sps:$4 sm:$0xff]   ;;  %v2516_v40 = vld [vmem:[#allocation2 + $0xc] ss:$16 sps:$4 sm:$0xff]   ;;  %v2521_v41 = vld [vmem:[#allocation2] ss:$16 sps:$4 sm:$0xff]  }
  0x42   :  { %1797 = vmatmul.mubr.msk.bf16.gmra.mxu0 %vm195_vm0, %v1974_v14  ;;  %1801 = vmatmul.mubr.msk.bf16.gmra.mxu1 %vm195_vm0, %v1974_v14  ;;  %v2525_v42 = vld [vmem:[#allocation2 + $0x8] ss:$16 sps:$4 sm:$0xff]   ;;  %v3032_v46 = vsub.s32 0, %v2573_v44  ;;  %v3031_v47 = vsub.s32 3, %v2573_v44  ;;  %v133_v48 = vld [vmem:[%s3023_s3] sm:$0xf] }
  0x43   :  { %519 = vmatpush1.bf16.msra.mxu0 %v2445_v17  ;;  %260 = vmatprep.mubr.bf16.mxu0 %v3033_v0  ;;  %v2587_v51 = vrot.slane %v133_v48, %v3030_v45  ;;  %v141_v52 = vsub.s32 1, %v2573_v44  ;;  %vm2330_vm1 = vmmov 0   ;;  %s2331_s2 = smov [#allocation10]  }
  0x44   :  { %560 = vmatpush1.bf16.msra.mxu1 %v2447_v18  ;;  %520 = vmatprep.subr.bf16.mxu0 %v2451_v19  ;;  %v138_v55 = vrot.slane %v133_v48, %v3032_v46  ;;  %v2598_v56 = vrot.slane %v133_v48, %v3031_v47  ;;  %s1777_s29 = sshll.u32 %s2331_s2, 4  ;;  %s1778_s29 = int_to_ptr.vmem [resolvable:$true] %s1777_s29 }
  0x45   :  { %561 = vmatprep.subr.bf16.mxu1 %v2454_v20  ;;  %333 = vmatprep.mubr.bf16.mxu1 %v3033_v0  ;;  %v142_v59 = vrot.slane %v133_v48, %v141_v52  ;;  %p2297_p7 = scmp.lt.s32.totalorder %s1778_s29, %s1778_s29 }
  0x47   :  { %521 = vmatpush1.bf16.msra.mxu0 %v2458_v21 }
  0x48   :  { %562 = vmatpush1.bf16.msra.mxu1 %v2461_v22  ;;  %522 = vmatprep.subr.bf16.mxu0 %v2466_v23 }
  0x49   :  { %563 = vmatprep.subr.bf16.mxu1 %v2470_v24 }
  0x4a   :  { %1798 = vmatmul.mubr.msk.bf16.gmra.mxu0 %vm195_vm0, %v1987_v25  ;;  %1802 = vmatmul.mubr.msk.bf16.gmra.mxu1 %vm195_vm0, %v1987_v25 }
  0x4b   :  { %523 = vmatpush1.bf16.msra.mxu0 %v2476_v26  ;;  %270 = vmatprep.mubr.bf16.mxu0 %v3033_v0 }
  0x4c   :  { %564 = vmatpush1.bf16.msra.mxu1 %v2480_v27  ;;  %524 = vmatprep.subr.bf16.mxu0 %v2482_v28 }
  0x4d   :  { %565 = vmatprep.subr.bf16.mxu1 %v2485_v29  ;;  %343 = vmatprep.mubr.bf16.mxu1 %v3033_v0 }
  0x4f   :  { %525 = vmatpush1.bf16.msra.mxu0 %v2489_v30 }
  0x50   :  { %566 = vmatpush1.bf16.msra.mxu1 %v2492_v31  ;;  %526 = vmatprep.subr.bf16.mxu0 %v2503_v34 }
  0x51   :  { %567 = vmatprep.subr.bf16.mxu1 %v2507_v35 }
  0x52   :  { %1799 = vmatmul.mubr.msk.bf16.gmra.mxu0 %vm195_vm0, %v1791_v36  ;;  %1803 = vmatmul.mubr.msk.bf16.gmra.mxu1 %vm195_vm0, %v1791_v36 }
  0x53   :  { %527 = vmatpush1.bf16.msra.mxu0 %v2509_v37  ;;  %546 = vmatprep.mubr.bf16.mxu0 %v3033_v0 }
  0x54   :  { %568 = vmatpush1.bf16.msra.mxu1 %v2511_v38  ;;  %528 = vmatprep.subr.bf16.mxu0 %v2513_v39 }
  0x55   :  { %569 = vmatprep.subr.bf16.mxu1 %v2516_v40  ;;  %587 = vmatprep.mubr.bf16.mxu1 %v3033_v0 }
  0x57   :  { %529 = vmatpush1.bf16.msra.mxu0 %v2521_v41 }
  0x58   :  { %570 = vmatpush1.bf16.msra.mxu1 %v2525_v42  ;;  %625 = vmatprep.subr.bf16.mxu0 %v2411_v6 }
  0x59   :  { %666 = vmatprep.subr.bf16.mxu1 %v2413_v7 }
  0x5a   :  { %547 = vmatmul.mubr.bf16.vlgmr.msra.gmra.mxu0 %v3033_v0 }
  0x5b   :  { %588 = vmatmul.mubr.bf16.vlgmr.msra.gmra.mxu1 %v3033_v0  ;;  %626 = vmatpush1.bf16.msra.mxu0 %v2415_v8 }
  0x5c   :  { %667 = vmatpush1.bf16.msra.mxu1 %v2418_v9  ;;  %627 = vmatprep.subr.bf16.mxu0 %v2422_v10 }
  0x5d   :  { %668 = vmatprep.subr.bf16.mxu1 %v2426_v11  ;;  %657 = vmatprep.mubr.bf16.mxu0 %v3033_v0 }
  0x5e   :  { %698 = vmatprep.mubr.bf16.mxu1 %v3033_v0 }
  0x5f   :  { %628 = vmatpush1.bf16.msra.mxu0 %v2428_v12 }
  0x60   :  { %669 = vmatpush1.bf16.msra.mxu1 %v2430_v13  ;;  %629 = vmatprep.subr.bf16.mxu0 %v2439_v15 }
  0x61   :  { %670 = vmatprep.subr.bf16.mxu1 %v2442_v16 }
  0x63   :  { %630 = vmatpush1.bf16.msra.mxu0 %v2445_v17 }
  0x64   :  { %671 = vmatpush1.bf16.msra.mxu1 %v2447_v18  ;;  %631 = vmatprep.subr.bf16.mxu0 %v2451_v19 }
  0x65   :  { %672 = vmatprep.subr.bf16.mxu1 %v2454_v20 }
  0x67   :  { %632 = vmatpush1.bf16.msra.mxu0 %v2458_v21 }
  0x68   :  { %673 = vmatpush1.bf16.msra.mxu1 %v2461_v22  ;;  %633 = vmatprep.subr.bf16.mxu0 %v2466_v23 }
  0x69   :  { %674 = vmatprep.subr.bf16.mxu1 %v2470_v24 }
  0x6b   :  { %634 = vmatpush1.bf16.msra.mxu0 %v2476_v26 }
  0x6c   :  { %675 = vmatpush1.bf16.msra.mxu1 %v2480_v27  ;;  %635 = vmatprep.subr.bf16.mxu0 %v2482_v28 }
  0x6d   :  { %676 = vmatprep.subr.bf16.mxu1 %v2485_v29 }
  0x6f   :  { %636 = vmatpush1.bf16.msra.mxu0 %v2489_v30 }
  0x70   :  { %677 = vmatpush1.bf16.msra.mxu1 %v2492_v31  ;;  %637 = vmatprep.subr.bf16.mxu0 %v2503_v34 }
  0x71   :  { %678 = vmatprep.subr.bf16.mxu1 %v2507_v35 }
  0x73   :  { %638 = vmatpush1.bf16.msra.mxu0 %v2509_v37 }
  0x74   :  { %679 = vmatpush1.bf16.msra.mxu1 %v2511_v38  ;;  %639 = vmatprep.subr.bf16.mxu0 %v2513_v39 }
  0x75   :  { %680 = vmatprep.subr.bf16.mxu1 %v2516_v40 }
  0x77   :  { %640 = vmatpush1.bf16.msra.mxu0 %v2521_v41 }
  0x78   :  { %681 = vmatpush1.bf16.msra.mxu1 %v2525_v42  ;;  %736 = vmatprep.subr.bf16.mxu0 %v2411_v6 }
  0x79   :  { %777 = vmatprep.subr.bf16.mxu1 %v2413_v7 }
  0xfa   :  { %v2581_v49 = vpop.f32.mrf.mxu0  ;;  %v2583_v50 = vpop.f32.mrf.mxu1 }
  0xfc   :  { %v2590_v53 = vpop.f32.mrf.mxu0  ;;  %v2592_v54 = vpop.f32.mrf.mxu1 }
  0xfe   :  { %v246_v57 = vpop.f32.mrf.mxu0  ;;  %v319_v58 = vpop.f32.mrf.mxu1 }
  0xff   :  { %v2600_v60 = vadd.f32 %v246_v57, %v138_v55  ;;  %v2603_v61 = vadd.f32 %v319_v58, %v2587_v51 }
 0x100   :  { %v248_v62 = vpop.f32.mrf.mxu0  ;;  %v321_v63 = vpop.f32.mrf.mxu1 }
 0x101   :  { %v2605_v1 = vadd.f32 %v248_v62, %v142_v59  ;;  %v2608_v2 = vadd.f32 %v321_v63, %v2598_v56 }
 0x102   :  { %v252_v3 = vpop.f32.mrf.mxu0  ;;  %v325_v4 = vpop.f32.mrf.mxu1 }
 0x103   :  { %v2610_v5 = vadd.f32 %v252_v3, %v138_v55  ;;  %v2613_v14 = vadd.f32 %v325_v4, %v2587_v51 }
 0x104   :  { %v254_v25 = vpop.f32.mrf.mxu0  ;;  %v327_v32 = vpop.f32.mrf.mxu1 }
 0x105   :  { %3038 = vst [vmem:[#allocation16_spill] sm:$0xff] %v2613_v14  ;;  %v2615_v33 = vadd.f32 %v254_v25, %v142_v59  ;;  %v2618_v36 = vadd.f32 %v327_v32, %v2598_v56 }
 0x106   :  { %v256_v43 = vpop.f32.mrf.mxu0  ;;  %v329_v48 = vpop.f32.mrf.mxu1 }
 0x107   :  { %v2620_v52 = vadd.f32 %v256_v43, %v138_v55  ;;  %v2623_v57 = vadd.f32 %v329_v48, %v2587_v51 }
 0x108   :  { %v258_v58 = vpop.f32.mrf.mxu0  ;;  %v331_v62 = vpop.f32.mrf.mxu1 }
 0x109   :  { %3039 = vst [vmem:[#allocation17_spill] sm:$0xff] %v2620_v52  ;;  %3040 = vst [vmem:[#allocation18_spill] sm:$0xff] %v2623_v57  ;;  %v2625_v63 = vadd.f32 %v258_v58, %v142_v59  ;;  %v2628_v3 = vadd.f32 %v331_v62, %v2598_v56 }
 0x10a   :  { %v262_v4 = vpop.f32.mrf.mxu0  ;;  %v335_v25 = vpop.f32.mrf.mxu1 }
 0x10b   :  { %3041 = vst [vmem:[#allocation19_spill] sm:$0xff] %v2625_v63  ;;  %3042 = vst [vmem:[#allocation20_spill] sm:$0xff] %v2628_v3  ;;  %v2630_v45 = vadd.f32 %v262_v4, %v138_v55  ;;  %v2633_v32 = vadd.f32 %v335_v25, %v2587_v51 }
 0x10c   :  { %v264_v47 = vpop.f32.mrf.mxu0  ;;  %v337_v43 = vpop.f32.mrf.mxu1 }
 0x10d   :  { %3043 = vst [vmem:[#allocation21_spill] sm:$0xff] %v2630_v45  ;;  %3044 = vst [vmem:[#allocation22_spill] sm:$0xff] %v2633_v32  ;;  %v2635_v46 = vadd.f32 %v264_v47, %v142_v59  ;;  %v2638_v48 = vadd.f32 %v337_v43, %v2598_v56 }
 0x10e   :  { %v266_v0 = vpop.f32.mrf.mxu0  ;;  %v339_v58 = vpop.f32.mrf.mxu1 }
 0x10f   :  { %3045 = vst [vmem:[#allocation23_spill] sm:$0xff] %v2635_v46  ;;  %3046 = vst [vmem:[#allocation24_spill] sm:$0xff] %v2638_v48  ;;  %v2640_v44 = vadd.f32 %v266_v0, %v138_v55  ;;  %v2643_v62 = vadd.f32 %v339_v58, %v2587_v51 }
 0x110   :  { %v268_v57 = vpop.f32.mrf.mxu0  ;;  %v341_v4 = vpop.f32.mrf.mxu1 }
 0x111   :  { %3047 = vst [vmem:[#allocation25_spill] sm:$0xff] %v2640_v44  ;;  %3048 = vst [vmem:[#allocation26_spill] sm:$0xff] %v2643_v62  ;;  %v2645_v45 = vadd.f32 %v268_v57, %v142_v59  ;;  %v2648_v25 = vadd.f32 %v341_v4, %v2598_v56 }
 0x112   :  { %v272_v32 = vpop.f32.mrf.mxu0  ;;  %v345_v47 = vpop.f32.mrf.mxu1 }
 0x113   :  { %3049 = vst [vmem:[#allocation27_spill] sm:$0xff] %v2645_v45  ;;  %3050 = vst [vmem:[#allocation28_spill] sm:$0xff] %v2648_v25  ;;  %v2650_v46 = vadd.f32 %v272_v32, %v138_v55  ;;  %v2653_v43 = vadd.f32 %v345_v47, %v2587_v51 }
 0x114   :  { %v274_v48 = vpop.f32.mrf.mxu0  ;;  %v347_v0 = vpop.f32.mrf.mxu1 }
 0x115   :  { %3051 = vst [vmem:[#allocation29_spill] sm:$0xff] %v2650_v46  ;;  %3052 = vst [vmem:[#allocation30_spill] sm:$0xff] %v2653_v43  ;;  %v2655_v44 = vadd.f32 %v274_v48, %v142_v59  ;;  %v2658_v58 = vadd.f32 %v347_v0, %v2598_v56  ;;  %v243_v46 = vadd.f32 %v2581_v49, %v138_v55 }
 0x116   :  { %v276_v62 = vpop.f32.mrf.mxu0  ;;  %v349_v57 = vpop.f32.mrf.mxu1  ;;  %v245_v0 = vadd.f32 %v2590_v53, %v142_v59  ;;  %v316_v53 = vadd.f32 %v2583_v50, %v2587_v51 }
 0x117   :  { %3053 = vst [vmem:[#allocation31_spill] sm:$0xff] %v2655_v44  ;;  %3054 = vst [vmem:[#allocation32_spill] sm:$0xff] %v2658_v58  ;;  %v2660_v45 = vadd.f32 %v276_v62, %v138_v55  ;;  %v2663_v4 = vadd.f32 %v349_v57, %v2587_v51  ;;  %v318_v55 = vadd.f32 %v2592_v54, %v2598_v56 }
 0x118   :  { %v278_v25 = vpop.f32.mrf.mxu0  ;;  %v351_v32 = vpop.f32.mrf.mxu1 }
 0x119   :  { %3055 = vst [vmem:[#allocation33_spill] sm:$0xff] %v2660_v45  ;;  %3056 = vst [vmem:[#allocation34_spill] sm:$0xff] %v2663_v4  ;;  %v2666_v47 = vadd.f32 %v278_v25, %v142_v59  ;;  %v2669_v43 = vadd.f32 %v351_v32, %v2598_v56 }
 0x11a   :  { %v548_v48 = vpop.f32.mrf.mxu0 }
 0x11b   :  { %v596_v58 = vadd.f32 %v548_v48, %v243_v46  ;;  %v589_v44 = vpop.f32.mrf.mxu1 }
 0x11c   :  { %v550_v3 = vpop.f32.mrf.mxu0  ;;  %v598_v32 = vadd.f32 %v589_v44, %v316_v53 }
 0x11d   :  { %v1836_v62 = vmul.f32 -1.442695, %v596_v58  ;;  %v597_v45 = vadd.f32 %v550_v3, %v245_v0  ;;  %v591_v63 = vpop.f32.mrf.mxu1 }
 0x11e   :  { %v552_v57 = vpop.f32.mrf.mxu0  ;;  %v599_v25 = vadd.f32 %v591_v63, %v318_v55 }
 0x11f   :  { %2035 = vpow2.f32 %v1836_v62  ;;  %v1837_v4 = vmul.f32 -1.442695, %v597_v45  ;;  %v593_v52 = vpop.f32.mrf.mxu1  ;;  %v3057_v57 = vmov 0  }
 0x120   :  { %v553_v14 = vpop.f32.mrf.mxu0  ;;  %v1838_v46 = vmul.f32 -1.442695, %v599_v25 }
 0x121   :  { %2037 = vpow2.f32 %v1837_v4  ;;  %v594_v49 = vpop.f32.mrf.mxu1 }
 0x122   :  { %2039 = vpow2.f32 %v1838_v46 }
 0x12c   :  { %v2036_v59 = vpop.eup %2035 }
 0x12d   :  { %v609_v58 = vadd.f32 1.0, %v2036_v59 }
 0x12e   :  { %v2038_v3 = vpop.eup %2037 }
 0x12f   :  { %2041 = vrcp.f32 %v609_v58  ;;  %v610_v48 = vadd.f32 1.0, %v2038_v3  ;;  %v2040_v45 = vpop.eup %2039 }
 0x130   :  { %2043 = vtanh.f32 %v598_v32  ;;  %v611_v0 = vadd.f32 1.0, %v2040_v45 }
 0x131   :  { %2045 = vrcp.f32 %v610_v48 }
 0x132   :  { %2047 = vrcp.f32 %v611_v0 }
 0x13c   :  { %v2042_v14 = vpop.eup %2041 }
 0x13d   :  { %v2044_v52 = vpop.eup %2043 }
 0x13e   :  { %v2046_v4 = vpop.eup %2045  ;;  %v620_v56 = vmul.f32 %v2044_v52, %v2042_v14 }
 0x13f   :  { %v619_v54 = vmul.f32 0.0, %v2046_v4  ;;  %v2048_v44 = vpop.eup %2047 }
 0x141   :  { %v2676_v63 = vadd.f32 %v620_v56, %v619_v54 }
 0x143   :  { %2049 = vtanh.f32 %v2676_v63 }
 0x150   :  { %v2050_v50 = vpop.eup %2049 }
 0x151   :  { %v623_v51 = vmul.f32 %v2050_v50, %v2048_v44 }
 0x153   :  { %v624_v62 = vpack.c.bf16 %v623_v51, %v623_v51 }
 0x155   :  { %658 = vmatmul.mubr.bf16.vlgmr.msra.gmra.mxu0 %v624_v62  ;;  %699 = vmatmul.mubr.bf16.vlgmr.msra.gmra.mxu1 %v624_v62 }
 0x156   :  { %737 = vmatpush1.bf16.msra.mxu0 %v2415_v8  ;;  %778 = vmatpush1.bf16.msra.mxu1 %v2418_v9 }
 0x157   :  { %738 = vmatprep.subr.bf16.mxu0 %v2422_v10  ;;  %779 = vmatprep.subr.bf16.mxu1 %v2426_v11 }
 0x158   :  { %768 = vmatprep.mubr.bf16.mxu0 %v3057_v57  ;;  %809 = vmatprep.mubr.bf16.mxu1 %v3057_v57 }
 0x15a   :  { %739 = vmatpush1.bf16.msra.mxu0 %v2428_v12  ;;  %780 = vmatpush1.bf16.msra.mxu1 %v2430_v13 }
 0x15b   :  { %740 = vmatprep.subr.bf16.mxu0 %v2439_v15  ;;  %781 = vmatprep.subr.bf16.mxu1 %v2442_v16 }
 0x15e   :  { %741 = vmatpush1.bf16.msra.mxu0 %v2445_v17  ;;  %782 = vmatpush1.bf16.msra.mxu1 %v2447_v18 }
 0x15f   :  { %742 = vmatprep.subr.bf16.mxu0 %v2451_v19  ;;  %783 = vmatprep.subr.bf16.mxu1 %v2454_v20 }
 0x162   :  { %743 = vmatpush1.bf16.msra.mxu0 %v2458_v21  ;;  %784 = vmatpush1.bf16.msra.mxu1 %v2461_v22 }
 0x163   :  { %744 = vmatprep.subr.bf16.mxu0 %v2466_v23  ;;  %785 = vmatprep.subr.bf16.mxu1 %v2470_v24 }
 0x166   :  { %745 = vmatpush1.bf16.msra.mxu0 %v2476_v26  ;;  %786 = vmatpush1.bf16.msra.mxu1 %v2480_v27 }
 0x167   :  { %746 = vmatprep.subr.bf16.mxu0 %v2482_v28  ;;  %787 = vmatprep.subr.bf16.mxu1 %v2485_v29 }
 0x16a   :  { %747 = vmatpush1.bf16.msra.mxu0 %v2489_v30  ;;  %788 = vmatpush1.bf16.msra.mxu1 %v2492_v31 }
 0x16b   :  { %748 = vmatprep.subr.bf16.mxu0 %v2503_v34  ;;  %789 = vmatprep.subr.bf16.mxu1 %v2507_v35 }
 0x16e   :  { %749 = vmatpush1.bf16.msra.mxu0 %v2509_v37  ;;  %790 = vmatpush1.bf16.msra.mxu1 %v2511_v38 }
 0x16f   :  { %750 = vmatprep.subr.bf16.mxu0 %v2513_v39  ;;  %791 = vmatprep.subr.bf16.mxu1 %v2516_v40 }
 0x172   :  { %751 = vmatpush1.bf16.msra.mxu0 %v2521_v41  ;;  %792 = vmatpush1.bf16.msra.mxu1 %v2525_v42 }
 0x173   :  { %847 = vmatprep.subr.bf16.mxu0 %v2411_v6  ;;  %888 = vmatprep.subr.bf16.mxu1 %v2413_v7 }
 0x215   :  { %v659_v49 = vpop.f32.mrf.mxu0  ;;  %v700_v55 = vpop.f32.mrf.mxu1 }
 0x216   :  { %v707_v25 = vadd.f32 %v659_v49, %v2600_v60  ;;  %v709_v4 = vadd.f32 %v700_v55, %v2603_v61 }
 0x217   :  { %v661_v53 = vpop.f32.mrf.mxu0  ;;  %v702_v46 = vpop.f32.mrf.mxu1 }
 0x218   :  { %v1839_v59 = vmul.f32 -1.442695, %v707_v25  ;;  %v708_v32 = vadd.f32 %v661_v53, %v2605_v1  ;;  %v710_v52 = vadd.f32 %v702_v46, %v2608_v2 }
 0x219   :  { %v663_v58 = vpop.f32.mrf.mxu0  ;;  %v704_v3 = vpop.f32.mrf.mxu1 }
 0x21a   :  { %2051 = vpow2.f32 %v1839_v59  ;;  %v1840_v48 = vmul.f32 -1.442695, %v708_v32  ;;  %v1841_v0 = vmul.f32 -1.442695, %v710_v52 }
 0x21b   :  { %v664_v45 = vpop.f32.mrf.mxu0  ;;  %v705_v14 = vpop.f32.mrf.mxu1 }
 0x21c   :  { %2053 = vpow2.f32 %v1840_v48 }
 0x21d   :  { %2055 = vtanh.f32 %v709_v4 }
 0x21e   :  { %2057 = vpow2.f32 %v1841_v0 }
 0x227   :  { %v2052_v54 = vpop.eup %2051 }
 0x228   :  { %v720_v56 = vadd.f32 1.0, %v2052_v54 }
 0x229   :  { %v2054_v60 = vpop.eup %2053 }
 0x22a   :  { %2059 = vrcp.f32 %v720_v56  ;;  %v721_v44 = vadd.f32 1.0, %v2054_v60  ;;  %v2056_v1 = vpop.eup %2055 }
 0x22b   :  { %v2058_v50 = vpop.eup %2057 }
 0x22c   :  { %2061 = vrcp.f32 %v721_v44  ;;  %v722_v25 = vadd.f32 1.0, %v2058_v50  ;;  %v3058_v44 = vld [vmem:[#allocation16_spill] sm:$0xff] }
 0x22e   :  { %2063 = vrcp.f32 %v722_v25 }
 0x237   :  { %v2060_v51 = vpop.eup %2059 }
 0x238   :  { %v731_v62 = vmul.f32 %v2060_v51, %v2056_v1 }
 0x239   :  { %v2062_v49 = vpop.eup %2061 }
 0x23a   :  { %v730_v53 = vmul.f32 %v2062_v49, %v2676_v63 }
 0x23b   :  { %v2064_v61 = vpop.eup %2063 }
 0x23c   :  { %v2718_v2 = vadd.f32 %v731_v62, %v730_v53 }
 0x23e   :  { %2065 = vtanh.f32 %v2718_v2 }
 0x24b   :  { %v2066_v55 = vpop.eup %2065 }
 0x24c   :  { %v734_v46 = vmul.f32 %v2066_v55, %v2064_v61 }
 0x24e   :  { %v735_v59 = vpack.c.bf16 %v734_v46, %v734_v46 }
 0x250   :  { %769 = vmatmul.mubr.bf16.vlgmr.msra.gmra.mxu0 %v735_v59  ;;  %810 = vmatmul.mubr.bf16.vlgmr.msra.gmra.mxu1 %v735_v59 }
 0x251   :  { %848 = vmatpush1.bf16.msra.mxu0 %v2415_v8  ;;  %889 = vmatpush1.bf16.msra.mxu1 %v2418_v9 }
 0x252   :  { %849 = vmatprep.subr.bf16.mxu0 %v2422_v10  ;;  %890 = vmatprep.subr.bf16.mxu1 %v2426_v11 }
 0x253   :  { %879 = vmatprep.mubr.bf16.mxu0 %v3057_v57  ;;  %920 = vmatprep.mubr.bf16.mxu1 %v3057_v57 }
 0x255   :  { %850 = vmatpush1.bf16.msra.mxu0 %v2428_v12  ;;  %891 = vmatpush1.bf16.msra.mxu1 %v2430_v13 }
 0x256   :  { %851 = vmatprep.subr.bf16.mxu0 %v2439_v15  ;;  %892 = vmatprep.subr.bf16.mxu1 %v2442_v16 }
 0x259   :  { %852 = vmatpush1.bf16.msra.mxu0 %v2445_v17  ;;  %893 = vmatpush1.bf16.msra.mxu1 %v2447_v18 }
 0x25a   :  { %853 = vmatprep.subr.bf16.mxu0 %v2451_v19  ;;  %894 = vmatprep.subr.bf16.mxu1 %v2454_v20 }
 0x25d   :  { %854 = vmatpush1.bf16.msra.mxu0 %v2458_v21  ;;  %895 = vmatpush1.bf16.msra.mxu1 %v2461_v22 }
 0x25e   :  { %855 = vmatprep.subr.bf16.mxu0 %v2466_v23  ;;  %896 = vmatprep.subr.bf16.mxu1 %v2470_v24 }
 0x261   :  { %856 = vmatpush1.bf16.msra.mxu0 %v2476_v26  ;;  %897 = vmatpush1.bf16.msra.mxu1 %v2480_v27 }
 0x262   :  { %857 = vmatprep.subr.bf16.mxu0 %v2482_v28  ;;  %898 = vmatprep.subr.bf16.mxu1 %v2485_v29 }
 0x265   :  { %858 = vmatpush1.bf16.msra.mxu0 %v2489_v30  ;;  %899 = vmatpush1.bf16.msra.mxu1 %v2492_v31 }
 0x266   :  { %859 = vmatprep.subr.bf16.mxu0 %v2503_v34  ;;  %900 = vmatprep.subr.bf16.mxu1 %v2507_v35 }
 0x269   :  { %860 = vmatpush1.bf16.msra.mxu0 %v2509_v37  ;;  %901 = vmatpush1.bf16.msra.mxu1 %v2511_v38 }
 0x26a   :  { %861 = vmatprep.subr.bf16.mxu0 %v2513_v39  ;;  %902 = vmatprep.subr.bf16.mxu1 %v2516_v40 }
 0x26d   :  { %862 = vmatpush1.bf16.msra.mxu0 %v2521_v41  ;;  %903 = vmatpush1.bf16.msra.mxu1 %v2525_v42 }
 0x26e   :  { %958 = vmatprep.subr.bf16.mxu0 %v2411_v6  ;;  %999 = vmatprep.subr.bf16.mxu1 %v2413_v7 }
 0x310   :  { %v770_v63 = vpop.f32.mrf.mxu0  ;;  %v811_v32 = vpop.f32.mrf.mxu1 }
 0x311   :  { %v818_v58 = vadd.f32 %v770_v63, %v2610_v5  ;;  %v820_v1 = vadd.f32 %v811_v32, %v3058_v44 }
 0x312   :  { %v772_v3 = vpop.f32.mrf.mxu0  ;;  %v813_v48 = vpop.f32.mrf.mxu1 }
 0x313   :  { %v1842_v45 = vmul.f32 -1.442695, %v818_v58  ;;  %v819_v14 = vadd.f32 %v772_v3, %v2615_v33  ;;  %v821_v60 = vadd.f32 %v813_v48, %v2618_v36 }
 0x314   :  { %v774_v52 = vpop.f32.mrf.mxu0  ;;  %v815_v4 = vpop.f32.mrf.mxu1 }
 0x315   :  { %2067 = vpow2.f32 %v1842_v45  ;;  %v1843_v0 = vmul.f32 -1.442695, %v819_v14  ;;  %v1844_v50 = vmul.f32 -1.442695, %v821_v60 }
 0x316   :  { %v775_v54 = vpop.f32.mrf.mxu0  ;;  %v816_v56 = vpop.f32.mrf.mxu1 }
 0x317   :  { %2069 = vpow2.f32 %v1843_v0  ;;  %v3061_v54 = vld [vmem:[#allocation20_spill] sm:$0xff]  ;;  %v3062_v56 = vld [vmem:[#allocation18_spill] sm:$0xff] }
 0x318   :  { %2071 = vtanh.f32 %v820_v1 }
 0x319   :  { %2073 = vpow2.f32 %v1844_v50 }
 0x322   :  { %v2068_v51 = vpop.eup %2067 }
 0x323   :  { %v831_v62 = vadd.f32 1.0, %v2068_v51 }
 0x324   :  { %v2070_v5 = vpop.eup %2069 }
 0x325   :  { %2075 = vrcp.f32 %v831_v62  ;;  %v832_v49 = vadd.f32 1.0, %v2070_v5  ;;  %v2072_v33 = vpop.eup %2071 }
 0x326   :  { %v2074_v25 = vpop.eup %2073 }
 0x327   :  { %2077 = vrcp.f32 %v832_v49  ;;  %v833_v46 = vadd.f32 1.0, %v2074_v25 }
 0x329   :  { %2079 = vrcp.f32 %v833_v46 }
 0x332   :  { %v2076_v53 = vpop.eup %2075 }
 0x333   :  { %v842_v61 = vmul.f32 %v2076_v53, %v2072_v33 }
 0x334   :  { %v2078_v55 = vpop.eup %2077 }
 0x335   :  { %v841_v59 = vmul.f32 %v2078_v55, %v2718_v2  ;;  %v3060_v2 = vld [vmem:[#allocation19_spill] sm:$0xff] }
 0x336   :  { %v2080_v63 = vpop.eup %2079 }
 0x337   :  { %v2760_v36 = vadd.f32 %v842_v61, %v841_v59 }
 0x339   :  { %2081 = vtanh.f32 %v2760_v36 }
 0x346   :  { %v2082_v32 = vpop.eup %2081 }
 0x347   :  { %v845_v58 = vmul.f32 %v2082_v32, %v2080_v63 }
 0x349   :  { %v846_v3 = vpack.c.bf16 %v845_v58, %v845_v58  ;;  %v2805_v58 = vld [vmem:[#allocation2 + $0xe0] ss:$16 sps:$4 sm:$0xff]  }
 0x34b   :  { %880 = vmatmul.mubr.bf16.vlgmr.msra.gmra.mxu0 %v846_v3  ;;  %921 = vmatmul.mubr.bf16.vlgmr.msra.gmra.mxu1 %v846_v3  ;;  %v2808_v3 = vld [vmem:[#allocation2 + $0xe8] ss:$16 sps:$4 sm:$0xff]  }
 0x34c   :  { %959 = vmatpush1.bf16.msra.mxu0 %v2415_v8  ;;  %1000 = vmatpush1.bf16.msra.mxu1 %v2418_v9 }
 0x34d   :  { %960 = vmatprep.subr.bf16.mxu0 %v2422_v10  ;;  %1001 = vmatprep.subr.bf16.mxu1 %v2426_v11  ;;  %v3059_v10 = vld [vmem:[#allocation17_spill] sm:$0xff] }
 0x34e   :  { %990 = vmatprep.mubr.bf16.mxu0 %v3057_v57  ;;  %1031 = vmatprep.mubr.bf16.mxu1 %v3057_v57 }
 0x350   :  { %961 = vmatpush1.bf16.msra.mxu0 %v2428_v12  ;;  %1002 = vmatpush1.bf16.msra.mxu1 %v2430_v13 }
 0x351   :  { %962 = vmatprep.subr.bf16.mxu0 %v2439_v15  ;;  %1003 = vmatprep.subr.bf16.mxu1 %v2442_v16 }
 0x354   :  { %963 = vmatpush1.bf16.msra.mxu0 %v2445_v17  ;;  %1004 = vmatpush1.bf16.msra.mxu1 %v2447_v18 }
 0x355   :  { %964 = vmatprep.subr.bf16.mxu0 %v2451_v19  ;;  %1005 = vmatprep.subr.bf16.mxu1 %v2454_v20 }
 0x358   :  { %965 = vmatpush1.bf16.msra.mxu0 %v2458_v21  ;;  %1006 = vmatpush1.bf16.msra.mxu1 %v2461_v22 }
 0x359   :  { %966 = vmatprep.subr.bf16.mxu0 %v2466_v23  ;;  %1007 = vmatprep.subr.bf16.mxu1 %v2470_v24 }
 0x35c   :  { %967 = vmatpush1.bf16.msra.mxu0 %v2476_v26  ;;  %1008 = vmatpush1.bf16.msra.mxu1 %v2480_v27 }
 0x35d   :  { %968 = vmatprep.subr.bf16.mxu0 %v2482_v28  ;;  %1009 = vmatprep.subr.bf16.mxu1 %v2485_v29 }
 0x360   :  { %969 = vmatpush1.bf16.msra.mxu0 %v2489_v30  ;;  %1010 = vmatpush1.bf16.msra.mxu1 %v2492_v31 }
 0x361   :  { %970 = vmatprep.subr.bf16.mxu0 %v2503_v34  ;;  %1011 = vmatprep.subr.bf16.mxu1 %v2507_v35 }
 0x364   :  { %971 = vmatpush1.bf16.msra.mxu0 %v2509_v37  ;;  %1012 = vmatpush1.bf16.msra.mxu1 %v2511_v38 }
 0x365   :  { %972 = vmatprep.subr.bf16.mxu0 %v2513_v39  ;;  %1013 = vmatprep.subr.bf16.mxu1 %v2516_v40 }
 0x368   :  { %973 = vmatpush1.bf16.msra.mxu0 %v2521_v41  ;;  %1014 = vmatpush1.bf16.msra.mxu1 %v2525_v42 }
 0x369   :  { %1069 = vmatprep.subr.bf16.mxu0 %v2411_v6  ;;  %1110 = vmatprep.subr.bf16.mxu1 %v2413_v7 }
 0x40b   :  { %v881_v8 = vpop.f32.mrf.mxu0  ;;  %v922_v9 = vpop.f32.mrf.mxu1 }
 0x40c   :  { %v929_v11 = vadd.f32 %v881_v8, %v3059_v10  ;;  %v931_v7 = vadd.f32 %v922_v9, %v3062_v56  ;;  %v2814_v8 = vld [vmem:[#allocation2 + $0xcc] ss:$16 sps:$4 sm:$0xff]   ;;  %v2819_v9 = vld [vmem:[#allocation2 + $0xc0] ss:$16 sps:$4 sm:$0xff]   ;;  %v2822_v10 = vld [vmem:[#allocation2 + $0xc8] ss:$16 sps:$4 sm:$0xff]  }
 0x40d   :  { %v883_v12 = vpop.f32.mrf.mxu0  ;;  %v924_v13 = vpop.f32.mrf.mxu1 }
 0x40e   :  { %v1845_v15 = vmul.f32 -1.442695, %v929_v11  ;;  %v930_v48 = vadd.f32 %v883_v12, %v3060_v2  ;;  %v932_v6 = vadd.f32 %v924_v13, %v3061_v54  ;;  %v2825_v11 = vld [vmem:[#allocation2 + $0xa4] ss:$16 sps:$4 sm:$0xff]  }
 0x40f   :  { %v885_v45 = vpop.f32.mrf.mxu0  ;;  %v926_v14 = vpop.f32.mrf.mxu1 }
 0x410   :  { %2083 = vpow2.f32 %v1845_v15  ;;  %v1846_v52 = vmul.f32 -1.442695, %v930_v48  ;;  %v1847_v60 = vmul.f32 -1.442695, %v932_v6 }
 0x411   :  { %v886_v4 = vpop.f32.mrf.mxu0  ;;  %v927_v0 = vpop.f32.mrf.mxu1 }
 0x412   :  { %2085 = vpow2.f32 %v1846_v52 }
 0x413   :  { %2087 = vtanh.f32 %v931_v7 }
 0x414   :  { %2089 = vpow2.f32 %v1847_v60  ;;  %v2874_v60 = vld [vmem:[#allocation2 + $0xac] ss:$16 sps:$4 sm:$0xff]  }
 0x41d   :  { %v2084_v44 = vpop.eup %2083 }
 0x41e   :  { %v942_v1 = vadd.f32 1.0, %v2084_v44  ;;  %v2877_v44 = vld [vmem:[#allocation2 + $0xa0] ss:$16 sps:$4 sm:$0xff]  }
 0x41f   :  { %v2086_v50 = vpop.eup %2085 }
 0x420   :  { %2091 = vrcp.f32 %v942_v1  ;;  %v943_v51 = vadd.f32 1.0, %v2086_v50  ;;  %v2088_v62 = vpop.eup %2087  ;;  %v2880_v1 = vld [vmem:[#allocation2 + $0xa8] ss:$16 sps:$4 sm:$0xff]   ;;  %v2883_v50 = vld [vmem:[#allocation2 + $0x84] ss:$16 sps:$4 sm:$0xff]  }
 0x421   :  { %v2090_v5 = vpop.eup %2089 }
 0x422   :  { %2093 = vrcp.f32 %v943_v51  ;;  %v944_v53 = vadd.f32 1.0, %v2090_v5  ;;  %v2886_v51 = vld [vmem:[#allocation2 + $0x8c] ss:$16 sps:$4 sm:$0xff]   ;;  %v2892_v5 = vld [vmem:[#allocation2 + $0x88] ss:$16 sps:$4 sm:$0xff]  }
 0x424   :  { %2095 = vrcp.f32 %v944_v53  ;;  %v2904_v53 = vld [vmem:[#allocation2 + $0x68] ss:$16 sps:$4 sm:$0xff]  }
 0x42d   :  { %v2092_v49 = vpop.eup %2091 }
 0x42e   :  { %v953_v33 = vmul.f32 %v2092_v49, %v2088_v62  ;;  %v2889_v62 = vld [vmem:[#allocation2 + $0x80] ss:$16 sps:$4 sm:$0xff]   ;;  %v2895_v49 = vld [vmem:[#allocation2 + $0x64] ss:$16 sps:$4 sm:$0xff]  }
 0x42f   :  { %v2094_v25 = vpop.eup %2093 }
 0x430   :  { %v952_v61 = vmul.f32 %v2094_v25, %v2760_v36  ;;  %v2811_v36 = vld [vmem:[#allocation2 + $0xc4] ss:$16 sps:$4 sm:$0xff]   ;;  %v2901_v25 = vld [vmem:[#allocation2 + $0x60] ss:$16 sps:$4 sm:$0xff]  }
 0x431   :  { %v2096_v46 = vpop.eup %2095 }
 0x432   :  { %v2802_v55 = vadd.f32 %v953_v33, %v952_v61  ;;  %v2898_v33 = vld [vmem:[#allocation2 + $0x6c] ss:$16 sps:$4 sm:$0xff]   ;;  %v2907_v61 = vld [vmem:[#allocation2 + $0x44] ss:$16 sps:$4 sm:$0xff]  }
 0x434   :  { %2097 = vtanh.f32 %v2802_v55 }
 0x441   :  { %v2098_v59 = vpop.eup %2097 }
 0x442   :  { %v956_v63 = vmul.f32 %v2098_v59, %v2096_v46  ;;  %v2913_v46 = vld [vmem:[#allocation2 + $0x40] ss:$16 sps:$4 sm:$0xff]   ;;  %v2916_v59 = vld [vmem:[#allocation2 + $0x48] ss:$16 sps:$4 sm:$0xff]  }
 0x444   :  { %v957_v32 = vpack.c.bf16 %v956_v63, %v956_v63  ;;  %v2919_v63 = vld [vmem:[#allocation2 + $0x24] ss:$16 sps:$4 sm:$0xff]  }
 0x446   :  { %991 = vmatmul.mubr.bf16.vlgmr.msra.gmra.mxu0 %v957_v32  ;;  %1032 = vmatmul.mubr.bf16.vlgmr.msra.gmra.mxu1 %v957_v32  ;;  %v2922_v32 = vld [vmem:[#allocation2 + $0x2c] ss:$16 sps:$4 sm:$0xff]  }
 0x447   :  { %1070 = vmatpush1.bf16.msra.mxu0 %v2805_v58  ;;  %1111 = vmatpush1.bf16.msra.mxu1 %v2808_v3 }
 0x448   :  { %1071 = vmatprep.subr.bf16.mxu0 %v2811_v36  ;;  %1112 = vmatprep.subr.bf16.mxu1 %v2814_v8 }
 0x449   :  { %1101 = vmatprep.mubr.bf16.mxu0 %v3057_v57  ;;  %1142 = vmatprep.mubr.bf16.mxu1 %v3057_v57 }
 0x44b   :  { %1072 = vmatpush1.bf16.msra.mxu0 %v2819_v9  ;;  %1113 = vmatpush1.bf16.msra.mxu1 %v2822_v10 }
 0x44c   :  { %1073 = vmatprep.subr.bf16.mxu0 %v2825_v11  ;;  %1114 = vmatprep.subr.bf16.mxu1 %v2442_v16  ;;  %v2851_v16 = vld [vmem:[#allocation2 + $0xe4] ss:$16 sps:$4 sm:$0xff]  }
 0x44f   :  { %1074 = vmatpush1.bf16.msra.mxu0 %v2445_v17  ;;  %1115 = vmatpush1.bf16.msra.mxu1 %v2447_v18  ;;  %v2854_v17 = vld [vmem:[#allocation2 + $0xec] ss:$16 sps:$4 sm:$0xff]  }
 0x450   :  { %1075 = vmatprep.subr.bf16.mxu0 %v2451_v19  ;;  %1116 = vmatprep.subr.bf16.mxu1 %v2454_v20  ;;  %v3063_v20 = vld [vmem:[#allocation21_spill] sm:$0xff] }
 0x453   :  { %1076 = vmatpush1.bf16.msra.mxu0 %v2458_v21  ;;  %1117 = vmatpush1.bf16.msra.mxu1 %v2461_v22 }
 0x454   :  { %1077 = vmatprep.subr.bf16.mxu0 %v2466_v23  ;;  %1118 = vmatprep.subr.bf16.mxu1 %v2470_v24 }
 0x457   :  { %1078 = vmatpush1.bf16.msra.mxu0 %v2476_v26  ;;  %1119 = vmatpush1.bf16.msra.mxu1 %v2480_v27  ;;  %v3064_v26 = vld [vmem:[#allocation23_spill] sm:$0xff] }
 0x458   :  { %1079 = vmatprep.subr.bf16.mxu0 %v2482_v28  ;;  %1120 = vmatprep.subr.bf16.mxu1 %v2485_v29 }
 0x45b   :  { %1080 = vmatpush1.bf16.msra.mxu0 %v2489_v30  ;;  %1121 = vmatpush1.bf16.msra.mxu1 %v2492_v31 }
 0x45c   :  { %1081 = vmatprep.subr.bf16.mxu0 %v2503_v34  ;;  %1122 = vmatprep.subr.bf16.mxu1 %v2507_v35  ;;  %v3065_v35 = vld [vmem:[#allocation24_spill] sm:$0xff] }
 0x45f   :  { %1082 = vmatpush1.bf16.msra.mxu0 %v2509_v37  ;;  %1123 = vmatpush1.bf16.msra.mxu1 %v2511_v38  ;;  %v3066_v38 = vld [vmem:[#allocation22_spill] sm:$0xff] }
 0x460   :  { %1083 = vmatprep.subr.bf16.mxu0 %v2513_v39  ;;  %1124 = vmatprep.subr.bf16.mxu1 %v2516_v40 }
 0x463   :  { %1084 = vmatpush1.bf16.msra.mxu0 %v2521_v41  ;;  %1125 = vmatpush1.bf16.msra.mxu1 %v2525_v42 }
 0x464   :  { %1180 = vmatprep.subr.bf16.mxu0 %v2851_v16  ;;  %1221 = vmatprep.subr.bf16.mxu1 %v2854_v17 }
 0x506   :  { %v992_v18 = vpop.f32.mrf.mxu0  ;;  %v1033_v19 = vpop.f32.mrf.mxu1 }
 0x507   :  { %v1040_v21 = vadd.f32 %v992_v18, %v3063_v20  ;;  %v1042_v39 = vadd.f32 %v1033_v19, %v3066_v38  ;;  %v2925_v18 = vld [vmem:[#allocation2 + $0x20] ss:$16 sps:$4 sm:$0xff]   ;;  %v2928_v19 = vld [vmem:[#allocation2 + $0x28] ss:$16 sps:$4 sm:$0xff]   ;;  %v2931_v20 = vld [vmem:[#allocation2 + $0x4] ss:$16 sps:$4 sm:$0xff]  }
 0x508   :  { %v994_v22 = vpop.f32.mrf.mxu0  ;;  %v1035_v23 = vpop.f32.mrf.mxu1 }
 0x509   :  { %v1848_v24 = vmul.f32 -1.442695, %v1040_v21  ;;  %v1041_v27 = vadd.f32 %v994_v22, %v3064_v26  ;;  %v1043_v37 = vadd.f32 %v1035_v23, %v3065_v35  ;;  %v2934_v21 = vld [vmem:[#allocation2 + $0xc] ss:$16 sps:$4 sm:$0xff]   ;;  %v2937_v22 = vld [vmem:[#allocation2] ss:$16 sps:$4 sm:$0xff]  }
 0x50a   :  { %v996_v28 = vpop.f32.mrf.mxu0  ;;  %v1037_v29 = vpop.f32.mrf.mxu1  ;;  %v2940_v23 = vld [vmem:[#allocation2 + $0x8] ss:$16 sps:$4 sm:$0xff]  }
 0x50b   :  { %2099 = vpow2.f32 %v1848_v24  ;;  %v1849_v30 = vmul.f32 -1.442695, %v1041_v27  ;;  %v1850_v40 = vmul.f32 -1.442695, %v1043_v37  ;;  %v3067_v27 = vld [vmem:[#allocation25_spill] sm:$0xff] }
 0x50c   :  { %v997_v31 = vpop.f32.mrf.mxu0  ;;  %v1038_v34 = vpop.f32.mrf.mxu1 }
 0x50d   :  { %2101 = vpow2.f32 %v1849_v30  ;;  %v3068_v34 = vld [vmem:[#allocation27_spill] sm:$0xff] }
 0x50e   :  { %2103 = vtanh.f32 %v1042_v39 }
 0x50f   :  { %2105 = vpow2.f32 %v1850_v40 }
 0x518   :  { %v2100_v41 = vpop.eup %2099 }
 0x519   :  { %v1053_v42 = vadd.f32 1.0, %v2100_v41 }
 0x51a   :  { %v2102_v12 = vpop.eup %2101 }
 0x51b   :  { %2107 = vrcp.f32 %v1053_v42  ;;  %v1054_v13 = vadd.f32 1.0, %v2102_v12  ;;  %v2104_v15 = vpop.eup %2103  ;;  %v3069_v42 = vld [vmem:[#allocation28_spill] sm:$0xff]  ;;  %v3070_v12 = vld [vmem:[#allocation26_spill] sm:$0xff] }
 0x51c   :  { %v2106_v2 = vpop.eup %2105 }
 0x51d   :  { %2109 = vrcp.f32 %v1054_v13  ;;  %v1055_v52 = vadd.f32 1.0, %v2106_v2 }
 0x51f   :  { %2111 = vrcp.f32 %v1055_v52 }
 0x528   :  { %v2108_v48 = vpop.eup %2107 }
 0x529   :  { %v1064_v45 = vmul.f32 %v2108_v48, %v2104_v15 }
 0x52a   :  { %v2110_v14 = vpop.eup %2109 }
 0x52b   :  { %v1063_v4 = vmul.f32 %v2110_v14, %v2802_v55  ;;  %v2910_v55 = vld [vmem:[#allocation2 + $0x4c] ss:$16 sps:$4 sm:$0xff]  }
 0x52c   :  { %v2112_v54 = vpop.eup %2111 }
 0x52d   :  { %v2862_v0 = vadd.f32 %v1064_v45, %v1063_v4 }
 0x52f   :  { %2113 = vtanh.f32 %v2862_v0 }
 0x53c   :  { %v2114_v6 = vpop.eup %2113 }
 0x53d   :  { %v1067_v56 = vmul.f32 %v2114_v6, %v2112_v54 }
 0x53f   :  { %v1068_v7 = vpack.c.bf16 %v1067_v56, %v1067_v56 }
 0x541   :  { %1102 = vmatmul.mubr.bf16.vlgmr.msra.gmra.mxu0 %v1068_v7  ;;  %1143 = vmatmul.mubr.bf16.vlgmr.msra.gmra.mxu1 %v1068_v7 }
 0x542   :  { %1181 = vmatpush1.bf16.msra.mxu0 %v2805_v58  ;;  %1222 = vmatpush1.bf16.msra.mxu1 %v2808_v3 }
 0x543   :  { %1182 = vmatprep.subr.bf16.mxu0 %v2811_v36  ;;  %1223 = vmatprep.subr.bf16.mxu1 %v2814_v8 }
 0x544   :  { %1212 = vmatprep.mubr.bf16.mxu0 %v3057_v57  ;;  %1253 = vmatprep.mubr.bf16.mxu1 %v3057_v57 }
 0x546   :  { %1183 = vmatpush1.bf16.msra.mxu0 %v2819_v9  ;;  %1224 = vmatpush1.bf16.msra.mxu1 %v2822_v10 }
 0x547   :  { %1184 = vmatprep.subr.bf16.mxu0 %v2825_v11  ;;  %1225 = vmatprep.subr.bf16.mxu1 %v2874_v60 }
 0x54a   :  { %1185 = vmatpush1.bf16.msra.mxu0 %v2877_v44  ;;  %1226 = vmatpush1.bf16.msra.mxu1 %v2880_v1 }
 0x54b   :  { %1186 = vmatprep.subr.bf16.mxu0 %v2883_v50  ;;  %1227 = vmatprep.subr.bf16.mxu1 %v2886_v51 }
 0x54e   :  { %1187 = vmatpush1.bf16.msra.mxu0 %v2889_v62  ;;  %1228 = vmatpush1.bf16.msra.mxu1 %v2892_v5 }
 0x54f   :  { %1188 = vmatprep.subr.bf16.mxu0 %v2895_v49  ;;  %1229 = vmatprep.subr.bf16.mxu1 %v2898_v33 }
 0x552   :  { %1189 = vmatpush1.bf16.msra.mxu0 %v2901_v25  ;;  %1230 = vmatpush1.bf16.msra.mxu1 %v2904_v53 }
 0x553   :  { %1190 = vmatprep.subr.bf16.mxu0 %v2907_v61  ;;  %1231 = vmatprep.subr.bf16.mxu1 %v2910_v55 }
 0x556   :  { %1191 = vmatpush1.bf16.msra.mxu0 %v2913_v46  ;;  %1232 = vmatpush1.bf16.msra.mxu1 %v2916_v59 }
 0x557   :  { %1192 = vmatprep.subr.bf16.mxu0 %v2919_v63  ;;  %1233 = vmatprep.subr.bf16.mxu1 %v2922_v32 }
 0x55a   :  { %1193 = vmatpush1.bf16.msra.mxu0 %v2925_v18  ;;  %1234 = vmatpush1.bf16.msra.mxu1 %v2928_v19 }
 0x55b   :  { %1194 = vmatprep.subr.bf16.mxu0 %v2931_v20  ;;  %1235 = vmatprep.subr.bf16.mxu1 %v2934_v21 }
 0x55e   :  { %1195 = vmatpush1.bf16.msra.mxu0 %v2937_v22  ;;  %1236 = vmatpush1.bf16.msra.mxu1 %v2940_v23 }
 0x55f   :  { %1291 = vmatprep.subr.bf16.mxu0 %v2851_v16  ;;  %1332 = vmatprep.subr.bf16.mxu1 %v2854_v17 }
 0x601   :  { %v1103_v24 = vpop.f32.mrf.mxu0  ;;  %v1144_v26 = vpop.f32.mrf.mxu1 }
 0x602   :  { %v1151_v28 = vadd.f32 %v1103_v24, %v3067_v27  ;;  %v1153_v17 = vadd.f32 %v1144_v26, %v3070_v12  ;;  %v2020_v12 = vld [vmem:[#allocation8 + $0x38] sm:$0xff]  }
 0x603   :  { %v1105_v29 = vpop.f32.mrf.mxu0  ;;  %v1146_v30 = vpop.f32.mrf.mxu1 }
 0x604   :  { %v1851_v31 = vmul.f32 -1.442695, %v1151_v28  ;;  %v1152_v35 = vadd.f32 %v1105_v29, %v3068_v34  ;;  %v1154_v16 = vadd.f32 %v1146_v30, %v3069_v42  ;;  %v2019_v42 = vld [vmem:[#allocation7 + $0x38] sm:$0xff]  }
 0x605   :  { %v1107_v37 = vpop.f32.mrf.mxu0  ;;  %v1148_v38 = vpop.f32.mrf.mxu1 }
 0x606   :  { %2115 = vpow2.f32 %v1851_v31  ;;  %v1852_v39 = vmul.f32 -1.442695, %v1152_v35  ;;  %v1853_v13 = vmul.f32 -1.442695, %v1154_v16  ;;  %v2013_v38 = vld [vmem:[#allocation5] ss:$16 sps:$4 sm:$0xff]  }
 0x607   :  { %v1108_v40 = vpop.f32.mrf.mxu0  ;;  %v1149_v41 = vpop.f32.mrf.mxu1  ;;  %v2329_v16 = vmov 0.0  }
 0x608   :  { %2117 = vpow2.f32 %v1852_v39  ;;  %v2016_v40 = vld [vmem:[#allocation5 + $0x8] ss:$16 sps:$4 sm:$0xff]   ;;  %v2211_v41 = vld [vmem:[%s3020_s0 + $0x1c] sm:$0xf] }
 0x609   :  { %2119 = vtanh.f32 %v1153_v17  ;;  %v2021_v17 = vld [vmem:[#allocation7 + $0x30] sm:$0xff]  }
 0x60a   :  { %2121 = vpow2.f32 %v1853_v13  ;;  %v2023_v13 = vld [vmem:[#allocation7 + $0x28] sm:$0xff]  }
 0x613   :  { %v2116_v15 = vpop.eup %2115 }
 0x614   :  { %v1164_v2 = vadd.f32 1.0, %v2116_v15  ;;  %v2024_v15 = vld [vmem:[#allocation8 + $0x28] sm:$0xff]  }
 0x615   :  { %v2118_v48 = vpop.eup %2117 }
 0x616   :  { %2123 = vrcp.f32 %v1164_v2  ;;  %v1165_v45 = vadd.f32 1.0, %v2118_v48  ;;  %v2120_v14 = vpop.eup %2119  ;;  %v2025_v2 = vld [vmem:[#allocation7 + $0x20] sm:$0xff]  }
 0x617   :  { %v2122_v52 = vpop.eup %2121  ;;  %v2026_v48 = vld [vmem:[#allocation8 + $0x20] sm:$0xff]  }
 0x618   :  { %2125 = vrcp.f32 %v1165_v45  ;;  %v1166_v56 = vadd.f32 1.0, %v2122_v52  ;;  %v2027_v45 = vld [vmem:[#allocation7 + $0x18] sm:$0xff]   ;;  %v2029_v52 = vld [vmem:[#allocation7 + $0x10] sm:$0xff]  }
 0x61a   :  { %2127 = vrcp.f32 %v1166_v56  ;;  %v2033_v56 = vld [vmem:[#allocation7] sm:$0xff]  }
 0x623   :  { %v2124_v4 = vpop.eup %2123 }
 0x624   :  { %v1175_v54 = vmul.f32 %v2124_v4, %v2120_v14  ;;  %v2028_v14 = vld [vmem:[#allocation8 + $0x18] sm:$0xff]   ;;  %v2030_v4 = vld [vmem:[#allocation8 + $0x10] sm:$0xff]  }
 0x625   :  { %v2126_v6 = vpop.eup %2125 }
 0x626   :  { %v1174_v7 = vmul.f32 %v2126_v6, %v2862_v0  ;;  %v2032_v6 = vld [vmem:[#allocation8 + $0x8] sm:$0xff]  }
 0x627   :  { %v2128_v26 = vpop.eup %2127 }
 0x628   :  { %v2950_v24 = vadd.f32 %v1175_v54, %v1174_v7  ;;  %v2031_v54 = vld [vmem:[#allocation7 + $0x8] sm:$0xff]   ;;  %v2034_v7 = vld [vmem:[#allocation8] sm:$0xff]  }
 0x62a   :  { %2129 = vtanh.f32 %v2950_v24 }
 0x637   :  { %v2130_v27 = vpop.eup %2129 }
 0x638   :  { %v1178_v28 = vmul.f32 %v2130_v27, %v2128_v26  ;;  %v3075_v27 = vld [vmem:[#allocation33_spill] sm:$0xff] }
 0x63a   :  { %v1179_v29 = vpack.c.bf16 %v1178_v28, %v1178_v28 }
 0x63c   :  { %1213 = vmatmul.mubr.bf16.vlgmr.msra.gmra.mxu0 %v1179_v29  ;;  %1254 = vmatmul.mubr.bf16.vlgmr.msra.gmra.mxu1 %v1179_v29 }
 0x63d   :  { %1292 = vmatpush1.bf16.msra.mxu0 %v2805_v58  ;;  %1333 = vmatpush1.bf16.msra.mxu1 %v2808_v3  ;;  %v2015_v58 = vld [vmem:[#allocation5 + $0x4] ss:$16 sps:$4 sm:$0xff]   ;;  %v2018_v3 = vld [vmem:[#allocation5 + $0xc] ss:$16 sps:$4 sm:$0xff]  }
 0x63e   :  { %1293 = vmatprep.subr.bf16.mxu0 %v2811_v36  ;;  %1334 = vmatprep.subr.bf16.mxu1 %v2814_v8 }
 0x63f   :  { %1323 = vmatprep.mubr.bf16.mxu0 %v3057_v57  ;;  %1364 = vmatprep.mubr.bf16.mxu1 %v3057_v57 }
 0x641   :  { %1294 = vmatpush1.bf16.msra.mxu0 %v2819_v9  ;;  %1335 = vmatpush1.bf16.msra.mxu1 %v2822_v10  ;;  %v3071_v9 = vld [vmem:[#allocation29_spill] sm:$0xff] }
 0x642   :  { %1295 = vmatprep.subr.bf16.mxu0 %v2825_v11  ;;  %1336 = vmatprep.subr.bf16.mxu1 %v2874_v60 }
 0x645   :  { %1296 = vmatpush1.bf16.msra.mxu0 %v2877_v44  ;;  %1337 = vmatpush1.bf16.msra.mxu1 %v2880_v1  ;;  %v3072_v44 = vld [vmem:[#allocation31_spill] sm:$0xff] }
 0x646   :  { %1297 = vmatprep.subr.bf16.mxu0 %v2883_v50  ;;  %1338 = vmatprep.subr.bf16.mxu1 %v2886_v51 }
 0x649   :  { %1298 = vmatpush1.bf16.msra.mxu0 %v2889_v62  ;;  %1339 = vmatpush1.bf16.msra.mxu1 %v2892_v5 }
 0x64a   :  { %1299 = vmatprep.subr.bf16.mxu0 %v2895_v49  ;;  %1340 = vmatprep.subr.bf16.mxu1 %v2898_v33  ;;  %v3073_v33 = vld [vmem:[#allocation32_spill] sm:$0xff] }
 0x64d   :  { %1300 = vmatpush1.bf16.msra.mxu0 %v2901_v25  ;;  %1341 = vmatpush1.bf16.msra.mxu1 %v2904_v53  ;;  %v3074_v53 = vld [vmem:[#allocation30_spill] sm:$0xff] }
 0x64e   :  { %1301 = vmatprep.subr.bf16.mxu0 %v2907_v61  ;;  %1342 = vmatprep.subr.bf16.mxu1 %v2910_v55 }
 0x651   :  { %1302 = vmatpush1.bf16.msra.mxu0 %v2913_v46  ;;  %1343 = vmatpush1.bf16.msra.mxu1 %v2916_v59 }
 0x652   :  { %1303 = vmatprep.subr.bf16.mxu0 %v2919_v63  ;;  %1344 = vmatprep.subr.bf16.mxu1 %v2922_v32 }
 0x655   :  { %1304 = vmatpush1.bf16.msra.mxu0 %v2925_v18  ;;  %1345 = vmatpush1.bf16.msra.mxu1 %v2928_v19 }
 0x656   :  { %1305 = vmatprep.subr.bf16.mxu0 %v2931_v20  ;;  %1346 = vmatprep.subr.bf16.mxu1 %v2934_v21 }
 0x659   :  { %1306 = vmatpush1.bf16.msra.mxu0 %v2937_v22  ;;  %1347 = vmatpush1.bf16.msra.mxu1 %v2940_v23 }
 0x65a   :  { %1459 = vmatprep.subr.bf16.mxu0 %v2015_v58  ;;  %1499 = vmatprep.subr.bf16.mxu1 %v2018_v3  ;;  %v1405_v3 = vld [vmem:[%s3025_s5] sm:$0xf] }
 0x6fc   :  { %v1214_v36 = vpop.f32.mrf.mxu0  ;;  %v1255_v8 = vpop.f32.mrf.mxu1 }
 0x6fd   :  { %v1262_v10 = vadd.f32 %v1214_v36, %v3071_v9  ;;  %v1264_v61 = vadd.f32 %v1255_v8, %v3074_v53 }
 0x6fe   :  { %v1216_v11 = vpop.f32.mrf.mxu0  ;;  %v1257_v0 = vpop.f32.mrf.mxu1 }
 0x6ff   :  { %v1854_v60 = vmul.f32 -1.442695, %v1262_v10  ;;  %v1263_v1 = vadd.f32 %v1216_v11, %v3072_v44  ;;  %v1265_v25 = vadd.f32 %v1257_v0, %v3073_v33  ;;  %v3076_v0 = vld [vmem:[#allocation15_spill] sm:$0xff] }
 0x700   :  { %v1218_v50 = vpop.f32.mrf.mxu0  ;;  %v1259_v51 = vpop.f32.mrf.mxu1 }
 0x701   :  { %2131 = vpow2.f32 %v1854_v60  ;;  %v1855_v62 = vmul.f32 -1.442695, %v1263_v1  ;;  %v1856_v55 = vmul.f32 -1.442695, %v1265_v25  ;;  %v3077_v60 = vsub.s32 0, %v3076_v0 }
 0x702   :  { %v1219_v5 = vpop.f32.mrf.mxu0  ;;  %v1260_v49 = vpop.f32.mrf.mxu1 }
 0x703   :  { %2133 = vpow2.f32 %v1855_v62  ;;  %v1410_v44 = vrot.slane %v1405_v3, %v3077_v60 }
 0x704   :  { %2135 = vtanh.f32 %v1264_v61 }
 0x705   :  { %2137 = vpow2.f32 %v1856_v55 }
 0x70e   :  { %v2132_v46 = vpop.eup %2131 }
 0x70f   :  { %v1275_v59 = vadd.f32 1.0, %v2132_v46 }
 0x710   :  { %v2134_v63 = vpop.eup %2133 }
 0x711   :  { %2139 = vrcp.f32 %v1275_v59  ;;  %v1276_v32 = vadd.f32 1.0, %v2134_v63  ;;  %v2136_v18 = vpop.eup %2135 }
 0x712   :  { %v2138_v19 = vpop.eup %2137 }
 0x713   :  { %2141 = vrcp.f32 %v1276_v32  ;;  %v1277_v23 = vadd.f32 1.0, %v2138_v19  ;;  %v3079_v32 = vld [vmem:[#allocation34_spill] sm:$0xff] }
 0x715   :  { %2143 = vrcp.f32 %v1277_v23 }
 0x71e   :  { %v2140_v20 = vpop.eup %2139 }
 0x71f   :  { %v1286_v21 = vmul.f32 %v2140_v20, %v2136_v18 }
 0x720   :  { %v2142_v22 = vpop.eup %2141 }
 0x721   :  { %v1285_v30 = vmul.f32 %v2142_v22, %v2950_v24 }
 0x722   :  { %v2144_v34 = vpop.eup %2143 }
 0x723   :  { %v2990_v31 = vadd.f32 %v1286_v21, %v1285_v30  ;;  %v3080_v30 = vsub.s32 2, %v3076_v0 }
 0x725   :  { %2145 = vtanh.f32 %v2990_v31 }
 0x732   :  { %v2146_v35 = vpop.eup %2145 }
 0x733   :  { %v1289_v37 = vmul.f32 %v2146_v35, %v2144_v34 }
 0x735   :  { %v1290_v39 = vpack.c.bf16 %v1289_v37, %v1289_v37 }
 0x737   :  { %1324 = vmatmul.mubr.bf16.vlgmr.msra.gmra.mxu0 %v1290_v39  ;;  %1365 = vmatmul.mubr.bf16.vlgmr.msra.gmra.mxu1 %v1290_v39 }
 0x738   :  { %1460 = vmatpush1.bf16.msra.mxu0 %v2013_v38  ;;  %1477 = vmatprep.mubr.bf16.mxu0 %v3057_v57 }
 0x739   :  { %1500 = vmatpush1.bf16.msra.mxu1 %v2016_v40  ;;  %1517 = vmatprep.mubr.bf16.mxu1 %v3057_v57  ;;  %v2022_v57 = vld [vmem:[#allocation8 + $0x30] sm:$0xff]  }
 0x73a   :  { %1923 = vmatprep.subr.bf16.mxu1 %v2329_v16  ;;  %1903 = vmatprep.subr.bf16.mxu0 %v2329_v16 }
 0x73f   :  { %1864 = vmatmul.mubr.msk.bf16.vlgmr.msra.gmra.mxu0 %vm195_vm0, %v2211_v41  ;;  %1865 = vmatmul.mubr.msk.bf16.vlgmr.msra.gmra.mxu1 %vm195_vm0, %v2211_v41 }
 0x740   :  { %1924 = vmatpush3.bf16.msra.mxu1 %v2019_v42  ;;  %1904 = vmatpush3.bf16.msra.mxu0 %v2020_v12 }
 0x741   :  { %1925 = vmatprep.subr.bf16.mxu1 %v2329_v16  ;;  %1905 = vmatprep.subr.bf16.mxu0 %v2329_v16 }
 0x742   :  { %1939 = vmatprep.mubr.msk.bf16.mxu1 %vm2330_vm1, %v2329_v16  ;;  %1919 = vmatprep.mubr.msk.bf16.mxu0 %vm2330_vm1, %v2329_v16 }
 0x744   :  { %1926 = vmatpush3.bf16.msra.mxu1 %v2021_v17  ;;  %1906 = vmatpush3.bf16.msra.mxu0 %v2022_v57 }
 0x745   :  { %1927 = vmatprep.subr.bf16.mxu1 %v2329_v16  ;;  %1907 = vmatprep.subr.bf16.mxu0 %v2329_v16 }
 0x748   :  { %1928 = vmatpush3.bf16.msra.mxu1 %v2023_v13  ;;  %1908 = vmatpush3.bf16.msra.mxu0 %v2024_v15 }
 0x749   :  { %1929 = vmatprep.subr.bf16.mxu1 %v2329_v16  ;;  %1909 = vmatprep.subr.bf16.mxu0 %v2329_v16 }
 0x74c   :  { %1930 = vmatpush3.bf16.msra.mxu1 %v2025_v2  ;;  %1910 = vmatpush3.bf16.msra.mxu0 %v2026_v48 }
 0x74d   :  { %1931 = vmatprep.subr.bf16.mxu1 %v2329_v16  ;;  %1911 = vmatprep.subr.bf16.mxu0 %v2329_v16 }
 0x750   :  { %1932 = vmatpush3.bf16.msra.mxu1 %v2027_v45  ;;  %1912 = vmatpush3.bf16.msra.mxu0 %v2028_v14 }
 0x751   :  { %1933 = vmatprep.subr.bf16.mxu1 %v2329_v16  ;;  %1913 = vmatprep.subr.bf16.mxu0 %v2329_v16 }
 0x754   :  { %1934 = vmatpush3.bf16.msra.mxu1 %v2029_v52  ;;  %1914 = vmatpush3.bf16.msra.mxu0 %v2030_v4 }
 0x755   :  { %1935 = vmatprep.subr.bf16.mxu1 %v2329_v16  ;;  %1915 = vmatprep.subr.bf16.mxu0 %v2329_v16 }
 0x758   :  { %1936 = vmatpush3.bf16.msra.mxu1 %v2031_v54  ;;  %1916 = vmatpush3.bf16.msra.mxu0 %v2032_v6 }
 0x759   :  { %1937 = vmatprep.subr.bf16.mxu1 %v2329_v16  ;;  %1917 = vmatprep.subr.bf16.mxu0 %v2329_v16 }
 0x75c   :  { %1938 = vmatpush3.bf16.msra.mxu1 %v2033_v56  ;;  %1918 = vmatpush3.bf16.msra.mxu0 %v2034_v7 }
 0x7f7   :  { %v1325_v24 = vpop.f32.mrf.mxu0  ;;  %v1366_v26 = vpop.f32.mrf.mxu1 }
 0x7f8   :  { %v1373_v28 = vadd.f32 %v1325_v24, %v3075_v27  ;;  %v1375_v18 = vadd.f32 %v1366_v26, %v3079_v32 }
 0x7f9   :  { %v1327_v29 = vpop.f32.mrf.mxu0  ;;  %v1368_v58 = vpop.f32.mrf.mxu1 }
 0x7fa   :  { %v1857_v36 = vmul.f32 -1.442695, %v1373_v28  ;;  %v1374_v8 = vadd.f32 %v1327_v29, %v2666_v47  ;;  %v1376_v53 = vadd.f32 %v1368_v58, %v2669_v43  ;;  %v3078_v47 = vsub.s32 3, %v3076_v0  ;;  %v1884_v58 = vld [vmem:[%s3028_s8] ss:$0 sm:$0xff]  ;;  %s2292_s8 = scalar_lea.vmem %s1778_s29, 128 }
 0x7fb   :  { %v1329_v9 = vpop.f32.mrf.mxu0  ;;  %v1370_v10 = vpop.f32.mrf.mxu1  ;;  %v1414_v43 = vrot.slane %v1405_v3, %v3080_v30  ;;  %p2293_p6 = scmp.ne.s32.totalorder %s1778_s29, %s2292_s8  ;;  %p2298_p8 = scmp.lt.s32.totalorder %s2292_s8, %s2292_s8 }
 0x7fc   :  { %2147 = vpow2.f32 %v1857_v36  ;;  %v1858_v11 = vmul.f32 -1.442695, %v1374_v8  ;;  %v1418_v55 = vrot.slane %v1405_v3, %v3078_v47  ;;  %v1859_v19 = vmul.f32 -1.442695, %v1376_v53 }
 0x7fd   :  { %v1330_v1 = vpop.f32.mrf.mxu0  ;;  %v1371_v50 = vpop.f32.mrf.mxu1  ;;  %p2299_p9 = por %p2298_p8, %p2297_p7 }
 0x7fe   :  { %2149 = vpow2.f32 %v1858_v11 }
 0x7ff   :  { %v1479_v51 = vpop.f32.mrf.mxu0  ;;  %v1519_v62 = vpop.f32.mrf.mxu1  ;;  %p2300_p10 = pnand %p2299_p9, %p2293_p6 }
 0x800   :  { %v1480_v5 = vadd.f32 %v1479_v51, %v1410_v44  ;;  %v1520_v37 = vadd.f32 %v1519_v62, %v1414_v43 }
 0x801   :  { %v1481_v49 = vpop.f32.mrf.mxu0  ;;  %v1521_v33 = vpop.f32.mrf.mxu1 }
 0x802   :  { %v1866_v25 = vmul.f32 -1.442695, %v1480_v5  ;;  %v1522_v20 = vadd.f32 %v1521_v33, %v1418_v55 }
 0x803   :  { %v1482_v61 = vpop.f32.mrf.mxu0  ;;  %v1523_v46 = vpop.f32.mrf.mxu1 }
 0x804   :  { %2151 = vpow2.f32 %v1866_v25  ;;  %v1867_v34 = vmul.f32 -1.442695, %v1522_v20 }
 0x805   :  { %v1483_v59 = vpop.f32.mrf.mxu0  ;;  %v1524_v63 = vpop.f32.mrf.mxu1  ;;  %2153 = vtanh.f32 %v1375_v18 }
 0x806   :  { %2155 = vpow2.f32 %v1859_v19 }
 0x809   :  { %v2148_v21 = vpop.eup %2147 }
 0x80a   :  { %v1386_v22 = vadd.f32 1.0, %v2148_v21 }
 0x80b   :  { %v2150_v23 = vpop.eup %2149 }
 0x80c   :  { %2157 = vrcp.f32 %v1386_v22  ;;  %v1387_v35 = vadd.f32 1.0, %v2150_v23 }
 0x80e   :  { %2159 = vrcp.f32 %v1387_v35 }
 0x80f   :  { %2161 = vpow2.f32 %v1867_v34 }
 0x810   :  { %2163 = vtanh.f32 %v1520_v37 }
 0x811   :  { %v2152_v38 = vpop.eup %2151 }
 0x812   :  { %v1532_v39 = vadd.f32 1.0, %v2152_v38  ;;  %v2154_v40 = vpop.eup %2153 }
 0x813   :  { %v2156_v41 = vpop.eup %2155 }
 0x814   :  { %2165 = vrcp.f32 %v1532_v39  ;;  %v1388_v17 = vadd.f32 1.0, %v2156_v41 }
 0x816   :  { %2167 = vrcp.f32 %v1388_v17 }
 0x819   :  { %v2158_v42 = vpop.eup %2157 }
 0x81a   :  { %v1397_v16 = vmul.f32 %v2158_v42, %v2154_v40 }
 0x81b   :  { %v2160_v12 = vpop.eup %2159 }
 0x81c   :  { %v2162_v57 = vpop.eup %2161  ;;  %v1396_v13 = vmul.f32 %v2160_v12, %v2990_v31 }
 0x81d   :  { %v1533_v2 = vadd.f32 1.0, %v2162_v57  ;;  %v2164_v48 = vpop.eup %2163 }
 0x81e   :  { %v1398_v15 = vadd.f32 %v1397_v16, %v1396_v13 }
 0x820   :  { %2169 = vtanh.f32 %v1398_v15 }
 0x821   :  { %v2166_v45 = vpop.eup %2165  ;;  %2171 = vrcp.f32 %v1533_v2 }
 0x822   :  { %v1539_v14 = vmul.f32 %v2166_v45, %v2164_v48 }
 0x823   :  { %v2168_v52 = vpop.eup %2167 }
 0x824   :  { %2173 = vtanh.f32 %v1539_v14 }
 0x82d   :  { %v2170_v4 = vpop.eup %2169 }
 0x82e   :  { %v1400_v54 = vmul.f32 %v2170_v4, %v2168_v52  ;;  %v2172_v6 = vpop.eup %2171 }
 0x830   :  { %v1542_v56 = vpack.c.bf16 %v1400_v54, %v1400_v54 }
 0x831   :  { %v2174_v7 = vpop.eup %2173 }
 0x832   :  { %1940 = vmatmul.mubr.bf16.vlgmr.msra.gmra.mxu1 %v1542_v56  ;;  %v1541_v24 = vmul.f32 %v2174_v7, %v2172_v6 }
 0x834   :  { %v1559_v26 = vpack.c.bf16 %v1541_v24, %v1541_v24 }
 0x836   :  { %1920 = vmatmul.mubr.bf16.vlgmr.msra.gmra.mxu0 %v1559_v26 }
 0x8f2   :  { %v1746_v31 = vpop.f32.mrf.mxu1 }
 0x8f4   :  { %v1941_v27 = vpop.f32.mrf.mxu1 }
 0x8f6   :  { %v1658_v28 = vpop.f32.mrf.mxu0  ;;  %v1749_v29 = vpop.f32.mrf.mxu1 }
 0x8f7   :  { %v1747_v3 = vadd.f32 %v1746_v31, %v1658_v28 }
 0x8f8   :  { %v1921_v36 = vpop.f32.mrf.mxu0  ;;  %v1942_v8 = vpop.f32.mrf.mxu1 }
 0x8f9   :  { %v1759_v9 = vadd.f32 %v1884_v58, %v1747_v3 }
 0x8fa   :  { %v1661_v10 = vpop.f32.mrf.mxu0 }
 0x8fb   :  { %1760 = vmax.xlane.f32.xlu0 %v1759_v9 }
 0x8fc   :  { %v1922_v11 = vpop.f32.mrf.mxu0 }
 0x984   :  { %v1761_v0 = vpop.xlane.xlu0 %1760 }
 0x985   :  { %v1762_v60 = vsub.f32 %v1759_v9, %v1761_v0 }
 0x987   :  { %v1763_v44 = vmul.f32 1.442695, %v1762_v60 }
 0x989   :  { %2175 = vpow2.f32 %v1763_v44 }
 0x996   :  { %v2176_v1 = vpop.eup %2175 }
 0x997   :  { %1765 = vadd.xlane.f32.xlu0 %v2176_v1 }
 0xa20   :  { %v1766_v50 = vpop.xlane.xlu0 %1765 }
 0xa21   :  { %2177 = vlog2.f32 %v1766_v50 }
 0xa2e   :  { %v2178_v51 = vpop.eup %2177 }
 0xa2f   :  { %v1768_v62 = vmul.f32 0.6931472, %v2178_v51 }
 0xa31   :  { %v1769_v5 = vsub.f32 %v1762_v60, %v1768_v62 }
 0xa33   :  { %1770 = vst [vmem:[#allocation10] sm:$0xff] %v1769_v5 }
 0xa34   :  { %2303 = shalt.err (!%p2300_p10)
}
 0xa35   :  { %1780 = dma.vmem_to_hbm [thread:$0]  %s1778_s29, 128, %s3029_s9, [#allocation4]  }
 0xa36   :  { %2318 = dma.done.wait [#allocation4], 128  }
 0xa37   :  { %2319 = vsyncadd [#allocation4], 4294967168 }
 0xa38   :  { %1784 = vsyncpa [#allocation3], 1 }
 0xa39   :  { %1785 = vsyncpa [#allocation6], 1 }
 0xa3a   :  { %1786 = vsyncpa [#allocation9], 1 }
 0xa3b   :  { %1787 = vsyncpa [#allocation4], 1 }

</bundles_post_ra>
